<compile_context>
chip_gen: v5e
topology: v5e:2x2
jax: 0.10.0
libtpu: 0.0.40
codegen_flags: <defaults>
</compile_context>

<pallas_src>
import functools
import math

import jax
import jax.numpy as jnp
from jax.experimental import pallas as pl
from jax.experimental.pallas import tpu as pltpu

EMBED_DIM = 32
NUM_EXPERTS = 16
TOP_K = 2


def _round_up(x, m):
    return ((x + m - 1) // m) * m


def _moe_gate_kernel(x_ref, w_ref, out_ref, *, top_k):
    # x_ref: (TN, H)   w_ref: (H, E)   out_ref: (2*K, TN) packed lane-dense
    x = x_ref[...]
    w = w_ref[...]

    # Gating linear on the MXU (f32 accumulate; bf16 x would also be fine).
    logits = jnp.dot(x, w, preferred_element_type=jnp.float32)  # (TN, E)

    # Numerically stable softmax over experts (exact divide -> 1e-5 match).
    m = jnp.max(logits, axis=-1, keepdims=True)
    e = jnp.exp(logits - m)
    scores = e / jnp.sum(e, axis=-1, keepdims=True)

    # Top-k via iterative max + lowest-index argmax (matches lax.top_k
    # tie-breaking), masking out the selected expert each round.
    num_e = scores.shape[-1]
    lane_idx = jax.lax.broadcasted_iota(jnp.int32, scores.shape, 1)
    s = scores
    val_cols = []
    idx_cols = []
    for _ in range(top_k):
        vmax = jnp.max(s, axis=-1, keepdims=True)                       # (TN, 1)
        amax = jnp.min(
            jnp.where(s == vmax, lane_idx, num_e), axis=-1, keepdims=True
        )                                                               # (TN, 1)
        val_cols.append(vmax)
        idx_cols.append(amax.astype(jnp.float32))  # indices carried as f32
        s = jnp.where(lane_idx == amax, -jnp.inf, s)

    # Pack [w_0..w_{K-1}, i_0..i_{K-1}] as columns, then transpose once so the
    # stored block is (2K, TN): last dim is tile_n -> full-lane stores.
    packed = jnp.concatenate(val_cols + idx_cols, axis=-1)              # (TN, 2K)
    out_ref[...] = packed.T                                             # (2K, TN)


def moe_gate(hidden_states, weight, *, top_k=TOP_K, tile_n=1024):
    """hidden_states: (bsz, seq, h); weight: (num_experts, h).

    Returns (topk_idx, topk_weight, aux_loss) matching the PyTorch forward
    (aux_loss is None in eval mode)."""
    bsz, seq_len, h = hidden_states.shape
    n = bsz * seq_len
    num_experts = weight.shape[0]

    # Lane-dense tiling: tile_n is a multiple of 128, clamped for small N.
    tile_n = max(128, min(tile_n, _round_up(n, 128)))
    n_pad = _round_up(n, tile_n)

    x = hidden_states.reshape(n, h)
    if n_pad != n:
        x = jnp.pad(x, ((0, n_pad - n), (0, 0)))
    w_t = weight.T.astype(jnp.float32)  # (H, E); cast hoisted out of the kernel

    grid = (n_pad // tile_n,)
    cost = pl.CostEstimate(
        flops=2 * n_pad * h * num_experts,
        transcendentals=n_pad * num_experts,
        bytes_accessed=(
            n_pad * h * x.dtype.itemsize          # x read
            + h * num_experts * 4                 # weight read (resident)
            + 2 * top_k * n_pad * 4               # packed output write
        ),
    )

    packed = pl.pallas_call(
        functools.partial(_moe_gate_kernel, top_k=top_k),
        out_shape=jax.ShapeDtypeStruct((2 * top_k, n_pad), jnp.float32),
        grid=grid,
        in_specs=[
            pl.BlockSpec((tile_n, h), lambda i: (i, 0)),
            pl.BlockSpec((h, num_experts), lambda i: (0, 0)),
        ],
        out_specs=pl.BlockSpec((2 * top_k, tile_n), lambda i: (0, i)),
        compiler_params=pltpu.CompilerParams(
            dimension_semantics=("parallel",),
        ),
        cost_estimate=cost,
    )(x, w_t)

    topk_w = packed[:top_k, :n].T                       # (N, K) f32
    topk_i = packed[top_k:, :n].T.astype(jnp.int32)     # (N, K) int32
    aux_loss = None  # eval mode (self.training == False)
    return topk_i, topk_w, aux_loss


def _reference(hidden_states, weight, top_k=TOP_K):
    """Plain-JAX reference of the PyTorch forward for verification."""
    bsz, seq_len, h = hidden_states.shape
    x = hidden_states.reshape(-1, h)
    logits = x @ weight.T
    scores = jax.nn.softmax(logits, axis=-1)
    vals, idx = jax.lax.top_k(scores, top_k)  # sorted descending
    return idx.astype(jnp.int32), vals


if __name__ == "__main__":
    key = jax.random.PRNGKey(0)
    k_w, k_x = jax.random.split(key)

    bsz, seq_len = 2, 8

    # kaiming_uniform_(a=sqrt(5)) on (E, H) -> U(-1/sqrt(H), 1/sqrt(H))
    bound = 1.0 / math.sqrt(EMBED_DIM)
    weight = jax.random.uniform(
        k_w, (NUM_EXPERTS, EMBED_DIM), jnp.float32, minval=-bound, maxval=bound
    )
    hidden_states = jax.random.normal(k_x, (bsz, seq_len, EMBED_DIM), jnp.float32)

    topk_idx, topk_weight, aux_loss = moe_gate(hidden_states, weight)
    jax.block_until_ready((topk_idx, topk_weight))

    ref_idx, ref_vals = _reference(hidden_states, weight)
    assert topk_idx.shape == (bsz * seq_len, TOP_K)
    assert topk_weight.shape == (bsz * seq_len, TOP_K)
    assert jnp.allclose(topk_weight, ref_vals, atol=1e-5, rtol=1e-5)
    assert jnp.array_equal(topk_idx, ref_idx)
    assert aux_loss is None

    print("KERNEL_OK")
</pallas_src>

<mosaic_0001>
module attributes {stable_mosaic.version = 11 : i64} {
  func.func @_moe_gate_kernel(%arg0: i32, %arg1: memref<128x32xf32, #tpu.memory_space<vmem>>, %arg2: memref<32x16xf32, #tpu.memory_space<vmem>>, %arg3: memref<4x128xf32, #tpu.memory_space<vmem>>) attributes {dimension_semantics = [#tpu.dimension_semantics<parallel>], iteration_bounds = array<i64: 1>, scalar_prefetch = 0 : i64, scratch_operands = 0 : i64, tpu.core_type = #tpu.core_type<tc>, window_params = [{transform_indices = @transform_0, window_bounds = array<i64: 128, 32>}, {pipeline_mode = #tpu.pipeline_mode<synchronous>, transform_indices = @transform_1, window_bounds = array<i64: 32, 16>}, {transform_indices = @transform_2, window_bounds = array<i64: 4, 128>}]} {
    %c0 = arith.constant 0 : index
    %c0_0 = arith.constant 0 : index
    %0 = vector.load %arg1[%c0, %c0_0] : memref<128x32xf32, #tpu.memory_space<vmem>>, vector<128x32xf32>
    %c0_1 = arith.constant 0 : index
    %c0_2 = arith.constant 0 : index
    %1 = vector.load %arg2[%c0_1, %c0_2] : memref<32x16xf32, #tpu.memory_space<vmem>>, vector<32x16xf32>
    %cst = arith.constant dense<0.000000e+00> : vector<128x16xf32>
    %2 = tpu.matmul %0, %1, %cst {dimension_numbers = #tpu.dot_dimension_numbers<[1], [0], [0], [1], [0, 0, 1, 1], [], []>} : vector<128x32xf32>, vector<32x16xf32>, vector<128x16xf32> -> vector<128x16xf32>
    %cst_3 = arith.constant dense<0xFF800000> : vector<128xf32>
    %3 = vector.multi_reduction <maximumf>, %2, %cst_3 [1] : vector<128x16xf32> to vector<128xf32>
    %4 = vector.shape_cast %3 : vector<128xf32> to vector<128x1xf32>
    %5 = vector.broadcast %4 : vector<128x1xf32> to vector<128x16xf32>
    %6 = arith.subf %2, %5 : vector<128x16xf32>
    %7 = math.exp %6 : vector<128x16xf32>
    %cst_4 = arith.constant dense<0.000000e+00> : vector<128xf32>
    %8 = vector.multi_reduction <add>, %7, %cst_4 [1] : vector<128x16xf32> to vector<128xf32>
    %9 = vector.shape_cast %8 : vector<128xf32> to vector<128x1xf32>
    %10 = vector.broadcast %9 : vector<128x1xf32> to vector<128x16xf32>
    %11 = arith.divf %7, %10 : vector<128x16xf32>
    %12 = tpu.iota {dimensions = array<i32: 1>} : vector<128x16xi32>
    %cst_5 = arith.constant dense<0xFF800000> : vector<128xf32>
    %13 = vector.multi_reduction <maximumf>, %11, %cst_5 [1] : vector<128x16xf32> to vector<128xf32>
    %14 = vector.shape_cast %13 : vector<128xf32> to vector<128x1xf32>
    %15 = vector.broadcast %14 : vector<128x1xf32> to vector<128x16xf32>
    %16 = arith.cmpf oeq, %11, %15 : vector<128x16xf32>
    %c16_i32 = arith.constant 16 : i32
    %17 = vector.broadcast %c16_i32 : i32 to vector<128x16xi32>
    %18 = arith.select %16, %12, %17 : vector<128x16xi1>, vector<128x16xi32>
    %cst_6 = arith.constant dense<2147483647> : vector<128xi32>
    %19 = vector.multi_reduction <minsi>, %18, %cst_6 [1] : vector<128x16xi32> to vector<128xi32>
    %20 = vector.shape_cast %19 : vector<128xi32> to vector<128x1xi32>
    %21 = arith.sitofp %20 : vector<128x1xi32> to vector<128x1xf32>
    %22 = vector.broadcast %20 : vector<128x1xi32> to vector<128x16xi32>
    %23 = arith.cmpi eq, %12, %22 : vector<128x16xi32>
    %cst_7 = arith.constant 0xFF800000 : f32
    %24 = vector.broadcast %cst_7 : f32 to vector<128x16xf32>
    %25 = arith.select %23, %24, %11 : vector<128x16xi1>, vector<128x16xf32>
    %cst_8 = arith.constant dense<0xFF800000> : vector<128xf32>
    %26 = vector.multi_reduction <maximumf>, %25, %cst_8 [1] : vector<128x16xf32> to vector<128xf32>
    %27 = vector.shape_cast %26 : vector<128xf32> to vector<128x1xf32>
    %28 = vector.broadcast %27 : vector<128x1xf32> to vector<128x16xf32>
    %29 = arith.cmpf oeq, %25, %28 : vector<128x16xf32>
    %c16_i32_9 = arith.constant 16 : i32
    %30 = vector.broadcast %c16_i32_9 : i32 to vector<128x16xi32>
    %31 = arith.select %29, %12, %30 : vector<128x16xi1>, vector<128x16xi32>
    %cst_10 = arith.constant dense<2147483647> : vector<128xi32>
    %32 = vector.multi_reduction <minsi>, %31, %cst_10 [1] : vector<128x16xi32> to vector<128xi32>
    %33 = vector.shape_cast %32 : vector<128xi32> to vector<128x1xi32>
    %34 = arith.sitofp %33 : vector<128x1xi32> to vector<128x1xf32>
    %35 = tpu.concatenate %14, %27, %21, %34 in 1 : vector<128x1xf32>, vector<128x1xf32>, vector<128x1xf32>, vector<128x1xf32> -> vector<128x4xf32>
    %36 = tpu.transpose %35, [1, 0] : vector<128x4xf32> -> vector<4x128xf32>
    %c0_11 = arith.constant 0 : index
    %c0_12 = arith.constant 0 : index
    %37 = vector.load %arg3[%c0_11, %c0_12] : memref<4x128xf32, #tpu.memory_space<vmem>>, vector<4x128xf32>
    tpu.vector_store %arg3[%c0_11, %c0_12], %36 {strides = array<i32>} : memref<4x128xf32, #tpu.memory_space<vmem>>, vector<4x128xf32>,
    return
  }
  func.func @transform_0(%arg0: i32) -> (i32, i32) {
    %c0_i32 = arith.constant 0 : i32
    %c0_i32_0 = arith.constant 0 : i32
    return %arg0, %c0_i32 : i32, i32
  }
  func.func @transform_1(%arg0: i32) -> (i32, i32) {
    %c0_i32 = arith.constant 0 : i32
    %c0_i32_0 = arith.constant 0 : i32
    %c0_i32_1 = arith.constant 0 : i32
    return %c0_i32, %c0_i32_0 : i32, i32
  }
  func.func @transform_2(%arg0: i32) -> (i32, i32) {
    %c0_i32 = arith.constant 0 : i32
    %c0_i32_0 = arith.constant 0 : i32
    return %c0_i32, %arg0 : i32, i32
  }
}

</mosaic_0001>

<bundles_post_ra>
// kernel: tpu_custom_call.1
= control target key start
LH: loop header
LB: loop body
LE: loop exit
PB: predicated region body
PF: predicated region fallthrough
CT: control target
= control target key end

     0   :  { %vm32_vm0 = vcmask 261120   ;;  %s2835_s0 = inlined_call_operand.vmem [shape: f32[128,32], index: 0, kind: input, shape index: {}]   ;;  %s2836_s1 = inlined_call_operand.vmem [shape: f32[32,16], index: 1, kind: input, shape index: {}]   ;;  %s2837_s2 = inlined_call_operand.hbm [shape: f32[4,128], index: 2, kind: output, shape index: {}]  }
   0x1   :  { %v31_v0 = vld [vmem:[%s2836_s1 + $0x18] sm:$0xff]  ;;  %v30_v1 = vld [vmem:[%s2836_s1 + $0x10] sm:$0xff]  ;;  %v29_v2 = vld [vmem:[%s2836_s1 + $0x8] sm:$0xff] }
   0x2   :  { %93 = vmatpush.msra.mxu0 %v31_v0  ;;  %1353 = vmatpush.msra.mxu1 %v31_v0  ;;  %v28_v3 = vld [vmem:[%s2836_s1] sm:$0xff] }
   0x3   :  { %1354 = vmatpush.msra.mxu2 %v31_v0  ;;  %1355 = vmatpush.msra.mxu3 %v31_v0  ;;  %v12_v4 = vld [vmem:[%s2835_s0] sm:$0xff] }
   0x4   :  { %94 = vmatpush.msra.mxu0 %v30_v1  ;;  %1356 = vmatpush.msra.mxu1 %v30_v1  ;;  %v16_v5 = vld [vmem:[%s2835_s0 + $0x20] sm:$0xff] }
   0x5   :  { %1357 = vmatpush.msra.mxu2 %v30_v1  ;;  %1358 = vmatpush.msra.mxu3 %v30_v1 }
   0x6   :  { %95 = vmatpush.msra.mxu0 %v29_v2  ;;  %1359 = vmatpush.msra.mxu1 %v29_v2 }
   0x7   :  { %1360 = vmatpush.msra.mxu2 %v29_v2  ;;  %1361 = vmatpush.msra.mxu3 %v29_v2 }
   0x8   :  { %7 = vsyncpa [#allocation3], 0  ;;  %96 = vmatpush.msra.mxu0 %v28_v3  ;;  %1362 = vmatpush.msra.mxu1 %v28_v3  ;;  %v20_v6 = vld [vmem:[%s2835_s0 + $0x40] sm:$0xff]  ;;  %v13_v8 = vld [vmem:[%s2835_s0 + $0x8] sm:$0xff]  ;;  %vm146_vm1 = vcmask 130048   ;;  %s1328_s22 = sshll.u32 %s2837_s2, 4  ;;  %s1329_s22 = int_to_ptr.hbm [resolvable:$true] %s1328_s22 }
   0x9   :  { %v24_v7 = vld [vmem:[%s2835_s0 + $0x60] sm:$0xff]  ;;  %1337 = vmatmul.msk.f32.vlgmr.msra.gmra.mxu0 %vm32_vm0, %v12_v4  ;;  %1341 = vmatmul.msk.f32.vlgmr.msra.gmra.mxu1 %vm32_vm0, %v16_v5  ;;  %v17_v9 = vld [vmem:[%s2835_s0 + $0x28] sm:$0xff]  ;;  %v14_v12 = vld [vmem:[%s2835_s0 + $0x10] sm:$0xff] }
   0xa   :  { %1363 = vmatpush.msra.mxu2 %v28_v3  ;;  %1364 = vmatpush.msra.mxu3 %v28_v3  ;;  %v21_v10 = vld [vmem:[%s2835_s0 + $0x48] sm:$0xff]  ;;  %v18_v13 = vld [vmem:[%s2835_s0 + $0x30] sm:$0xff]  ;;  %v15_v16 = vld [vmem:[%s2835_s0 + $0x18] sm:$0xff] }
   0xb   :  { %1345 = vmatmul.msk.f32.vlgmr.msra.gmra.mxu2 %vm32_vm0, %v20_v6  ;;  %1349 = vmatmul.msk.f32.vlgmr.msra.gmra.mxu3 %vm32_vm0, %v24_v7  ;;  %v25_v11 = vld [vmem:[%s2835_s0 + $0x68] sm:$0xff]  ;;  %v22_v14 = vld [vmem:[%s2835_s0 + $0x50] sm:$0xff]  ;;  %v19_v17 = vld [vmem:[%s2835_s0 + $0x38] sm:$0xff] }
   0xc   :  { %v26_v15 = vld [vmem:[%s2835_s0 + $0x70] sm:$0xff]  ;;  %v23_v18 = vld [vmem:[%s2835_s0 + $0x58] sm:$0xff] }
   0xd   :  { %v27_v19 = vld [vmem:[%s2835_s0 + $0x78] sm:$0xff]  ;;  %s1456_s0 = smov [#allocation2]  }
   0xe   :  { %s1326_s20 = sshll.u32 %s1456_s0, 4  ;;  %s1327_s20 = int_to_ptr.vmem [resolvable:$true] %s1326_s20 }
  0x11   :  { %1338 = vmatmul.msk.f32.gmra.mxu0 %vm32_vm0, %v13_v8  ;;  %1342 = vmatmul.msk.f32.gmra.mxu1 %vm32_vm0, %v17_v9 }
  0x13   :  { %1346 = vmatmul.msk.f32.gmra.mxu2 %vm32_vm0, %v21_v10  ;;  %1350 = vmatmul.msk.f32.gmra.mxu3 %vm32_vm0, %v25_v11 }
  0x19   :  { %1339 = vmatmul.msk.f32.gmra.mxu0 %vm32_vm0, %v14_v12  ;;  %1343 = vmatmul.msk.f32.gmra.mxu1 %vm32_vm0, %v18_v13 }
  0x1b   :  { %1347 = vmatmul.msk.f32.gmra.mxu2 %vm32_vm0, %v22_v14  ;;  %1351 = vmatmul.msk.f32.gmra.mxu3 %vm32_vm0, %v26_v15 }
  0x21   :  { %1340 = vmatmul.msk.f32.gmra.mxu0 %vm32_vm0, %v15_v16  ;;  %1344 = vmatmul.msk.f32.gmra.mxu1 %vm32_vm0, %v19_v17 }
  0x23   :  { %1348 = vmatmul.msk.f32.gmra.mxu2 %vm32_vm0, %v23_v18  ;;  %1352 = vmatmul.msk.f32.gmra.mxu3 %vm32_vm0, %v27_v19 }
  0x86   :  { %v98_v20 = vpop.f32.mrf.mxu0  ;;  %v110_v21 = vpop.f32.mrf.mxu1 }
  0x87   :  { %v159_v22 = vsel %vm146_vm1, %v110_v21, -inf  ;;  %v147_v23 = vsel %vm146_vm1, %v98_v20, -inf }
  0x88   :  { %160 = vmax.xlane.f32.xlu2 %v159_v22  ;;  %148 = vmax.xlane.f32.xlu0 %v147_v23 }
  0x8e   :  { %v101_v24 = vpop.f32.mrf.mxu0  ;;  %v1550_v25 = vpop.f32.mrf.mxu1 }
  0x8f   :  { %v162_v26 = vsel %vm146_vm1, %v1550_v25, -inf  ;;  %v150_v27 = vsel %vm146_vm1, %v101_v24, -inf  ;;  %v1555_v28 = vpop.f32.mrf.mxu2  ;;  %v1557_v29 = vpop.f32.mrf.mxu3 }
  0x90   :  { %163 = vmax.xlane.f32.xlu2 %v162_v26  ;;  %151 = vmax.xlane.f32.xlu0 %v150_v27  ;;  %v171_v30 = vsel %vm146_vm1, %v1555_v28, -inf  ;;  %v183_v44 = vsel %vm146_vm1, %v1557_v29, -inf }
  0x96   :  { %v104_v31 = vpop.f32.mrf.mxu0  ;;  %v1561_v32 = vpop.f32.mrf.mxu1 }
  0x97   :  { %v165_v33 = vsel %vm146_vm1, %v1561_v32, -inf  ;;  %v153_v34 = vsel %vm146_vm1, %v104_v31, -inf  ;;  %v1566_v35 = vpop.f32.mrf.mxu2  ;;  %v1568_v36 = vpop.f32.mrf.mxu3 }
  0x98   :  { %172 = vmax.xlane.f32.xlu2 %v171_v30  ;;  %166 = vmax.xlane.f32.xlu0 %v165_v33  ;;  %v174_v37 = vsel %vm146_vm1, %v1566_v35, -inf  ;;  %v186_v51 = vsel %vm146_vm1, %v1568_v36, -inf }
  0x99   :  { %154 = vmax.xlane.f32.xlu1 %v153_v34 }
  0x9e   :  { %v107_v38 = vpop.f32.mrf.mxu0  ;;  %v1579_v43 = vpop.f32.mrf.mxu1 }
  0x9f   :  { %v156_v39 = vsel %vm146_vm1, %v107_v38, -inf  ;;  %v1573_v40 = vpop.f32.mrf.mxu2  ;;  %v1575_v41 = vpop.f32.mrf.mxu3  ;;  %v168_v45 = vsel %vm146_vm1, %v1579_v43, -inf }
  0xa0   :  { %175 = vmax.xlane.f32.xlu0 %v174_v37  ;;  %v189_v42 = vsel %vm146_vm1, %v1575_v41, -inf  ;;  %v177_v50 = vsel %vm146_vm1, %v1573_v40, -inf }
  0xa1   :  { %157 = vmax.xlane.f32.xlu1 %v156_v39  ;;  %190 = vmax.xlane.f32.xlu2 %v189_v42 }
  0xa7   :  { %v1585_v46 = vpop.f32.mrf.mxu2  ;;  %v1589_v48 = vpop.f32.mrf.mxu3 }
  0xa8   :  { %184 = vmax.xlane.f32.xlu0 %v183_v44  ;;  %v180_v47 = vsel %vm146_vm1, %v1585_v46, -inf  ;;  %v192_v49 = vsel %vm146_vm1, %v1589_v48, -inf }
  0xa9   :  { %169 = vmax.xlane.f32.xlu1 %v168_v45  ;;  %181 = vmax.xlane.f32.xlu2 %v180_v47 }
  0xb0   :  { %193 = vmax.xlane.f32.xlu0 %v192_v49 }
  0xb1   :  { %178 = vmax.xlane.f32.xlu1 %v177_v50 }
  0xb9   :  { %187 = vmax.xlane.f32.xlu1 %v186_v51 }
  0xfb   :  { %v161_v52 = vpop.xlane.xlu2 %160  ;;  %v149_v53 = vpop.xlane.xlu0 %148 }
  0xfc   :  { %v195_v54 = vsub.f32 %v98_v20, %v149_v53  ;;  %v199_v61 = vsub.f32 %v110_v21, %v161_v52 }
  0xfe   :  { %v211_v55 = vmul.f32 1.442695, %v195_v54  ;;  %v219_v63 = vmul.f32 1.442695, %v199_v61 }
 0x100   :  { %1366 = vpow2.f32 %v211_v55 }
 0x103   :  { %v164_v56 = vpop.xlane.xlu2 %163  ;;  %v152_v57 = vpop.xlane.xlu0 %151 }
 0x104   :  { %v196_v58 = vsub.f32 %v101_v24, %v152_v57  ;;  %v200_v6 = vsub.f32 %v1550_v25, %v164_v56 }
 0x106   :  { %v213_v59 = vmul.f32 1.442695, %v196_v58  ;;  %v1597_v60 = vpop.eup %1366  ;;  %v221_v8 = vmul.f32 1.442695, %v200_v6 }
 0x107   :  { %v243_v62 = vsel %vm146_vm1, %v1597_v60, 0.0 }
 0x108   :  { %1368 = vpow2.f32 %v213_v59  ;;  %244 = vadd.xlane.f32.xlu1 %v243_v62 }
 0x109   :  { %1370 = vpow2.f32 %v219_v63 }
 0x10b   :  { %v173_v0 = vpop.xlane.xlu2 %172  ;;  %v167_v3 = vpop.xlane.xlu0 %166 }
 0x10c   :  { %v155_v1 = vpop.xlane.xlu1 %154  ;;  %v201_v13 = vsub.f32 %v1561_v32, %v167_v3  ;;  %v203_v16 = vsub.f32 %v1555_v28, %v173_v0 }
 0x10d   :  { %v197_v2 = vsub.f32 %v104_v31, %v155_v1 }
 0x10e   :  { %v1601_v4 = vpop.eup %1368  ;;  %v223_v20 = vmul.f32 1.442695, %v201_v13  ;;  %v227_v21 = vmul.f32 1.442695, %v203_v16 }
 0x10f   :  { %v215_v5 = vmul.f32 1.442695, %v197_v2  ;;  %v246_v7 = vsel %vm146_vm1, %v1601_v4, 0.0  ;;  %v1606_v11 = vpop.eup %1370 }
 0x110   :  { %247 = vadd.xlane.f32.xlu2 %v246_v7  ;;  %v255_v18 = vsel %vm146_vm1, %v1606_v11, 0.0 }
 0x111   :  { %1372 = vpow2.f32 %v215_v5 }
 0x112   :  { %1374 = vpow2.f32 %v221_v8 }
 0x113   :  { %v176_v17 = vpop.xlane.xlu0 %175 }
 0x114   :  { %v158_v9 = vpop.xlane.xlu1 %157  ;;  %v191_v10 = vpop.xlane.xlu2 %190  ;;  %v204_v27 = vsub.f32 %v1566_v35, %v176_v17 }
 0x115   :  { %v198_v12 = vsub.f32 %v107_v38, %v158_v9  ;;  %v209_v45 = vsub.f32 %v1575_v41, %v191_v10 }
 0x116   :  { %v229_v33 = vmul.f32 1.442695, %v204_v27 }
 0x117   :  { %v217_v14 = vmul.f32 1.442695, %v198_v12  ;;  %v1609_v15 = vpop.eup %1372  ;;  %v239_v51 = vmul.f32 1.442695, %v209_v45 }
 0x118   :  { %256 = vadd.xlane.f32.xlu2 %v255_v18  ;;  %v249_v19 = vsel %vm146_vm1, %v1609_v15, 0.0  ;;  %v1616_v24 = vpop.eup %1374 }
 0x119   :  { %1376 = vpow2.f32 %v217_v14  ;;  %250 = vadd.xlane.f32.xlu0 %v249_v19  ;;  %v258_v30 = vsel %vm146_vm1, %v1616_v24, 0.0 }
 0x11a   :  { %1378 = vpow2.f32 %v223_v20 }
 0x11b   :  { %1380 = vpow2.f32 %v227_v21  ;;  %v185_v31 = vpop.xlane.xlu0 %184 }
 0x11c   :  { %v170_v22 = vpop.xlane.xlu1 %169  ;;  %v182_v23 = vpop.xlane.xlu2 %181  ;;  %v207_v35 = vsub.f32 %v1557_v29, %v185_v31 }
 0x11d   :  { %v206_v25 = vsub.f32 %v1585_v46, %v182_v23  ;;  %v202_v42 = vsub.f32 %v1579_v43, %v170_v22 }
 0x11f   :  { %v1619_v26 = vpop.eup %1376  ;;  %v233_v32 = vmul.f32 1.442695, %v206_v25  ;;  %v225_v50 = vmul.f32 1.442695, %v202_v42 }
 0x120   :  { %v252_v28 = vsel %vm146_vm1, %v1619_v26, 0.0  ;;  %v1626_v37 = vpop.eup %1378 }
 0x121   :  { %253 = vadd.xlane.f32.xlu1 %v252_v28  ;;  %259 = vadd.xlane.f32.xlu0 %v258_v30  ;;  %v1629_v39 = vpop.eup %1380  ;;  %1382 = vpow2.f32 %v233_v32  ;;  %v261_v46 = vsel %vm146_vm1, %v1626_v37, 0.0 }
 0x122   :  { %1384 = vpow2.f32 %v229_v33  ;;  %v267_v47 = vsel %vm146_vm1, %v1629_v39, 0.0 }
 0x123   :  { %v194_v49 = vpop.xlane.xlu0 %193 }
 0x124   :  { %v179_v34 = vpop.xlane.xlu1 %178  ;;  %v210_v41 = vsub.f32 %v1589_v48, %v194_v49 }
 0x125   :  { %v205_v38 = vsub.f32 %v1573_v40, %v179_v34  ;;  %v235_v40 = vmul.f32 1.442695, %v207_v35 }
 0x126   :  { %v241_v58 = vmul.f32 1.442695, %v210_v41 }
 0x127   :  { %v231_v44 = vmul.f32 1.442695, %v205_v38  ;;  %v1638_v29 = vpop.eup %1382 }
 0x128   :  { %v1640_v43 = vpop.eup %1384  ;;  %v276_v55 = vsel %vm146_vm1, %v1638_v29, 0.0 }
 0x129   :  { %1386 = vpow2.f32 %v231_v44  ;;  %262 = vadd.xlane.f32.xlu1 %v261_v46  ;;  %268 = vadd.xlane.f32.xlu0 %v267_v47  ;;  %v270_v56 = vsel %vm146_vm1, %v1640_v43, 0.0 }
 0x12a   :  { %1388 = vpow2.f32 %v235_v40 }
 0x12b   :  { %1390 = vpow2.f32 %v225_v50 }
 0x12c   :  { %v188_v52 = vpop.xlane.xlu1 %187  ;;  %1392 = vpow2.f32 %v239_v51 }
 0x12d   :  { %v208_v54 = vsub.f32 %v1568_v36, %v188_v52  ;;  %1394 = vpow2.f32 %v241_v58 }
 0x12f   :  { %v1643_v53 = vpop.eup %1386  ;;  %v237_v48 = vmul.f32 1.442695, %v208_v54 }
 0x130   :  { %v273_v57 = vsel %vm146_vm1, %v1643_v53, 0.0  ;;  %v1652_v59 = vpop.eup %1388 }
 0x131   :  { %271 = vadd.xlane.f32.xlu1 %v270_v56  ;;  %274 = vadd.xlane.f32.xlu2 %v273_v57  ;;  %v1654_v61 = vpop.eup %1390  ;;  %1396 = vpow2.f32 %v237_v48  ;;  %v279_v62 = vsel %vm146_vm1, %v1652_v59, 0.0 }
 0x132   :  { %277 = vadd.xlane.f32.xlu0 %v276_v55  ;;  %v1656_v36 = vpop.eup %1392  ;;  %v264_v63 = vsel %vm146_vm1, %v1654_v61, 0.0 }
 0x133   :  { %v285_v0 = vsel %vm146_vm1, %v1656_v36, 0.0  ;;  %v1664_v1 = vpop.eup %1394 }
 0x134   :  { %v288_v3 = vsel %vm146_vm1, %v1664_v1, 0.0 }
 0x137   :  { %v1666_v2 = vpop.eup %1396 }
 0x138   :  { %v282_v5 = vsel %vm146_vm1, %v1666_v2, 0.0 }
 0x139   :  { %280 = vadd.xlane.f32.xlu1 %v279_v62  ;;  %265 = vadd.xlane.f32.xlu2 %v264_v63 }
 0x13a   :  { %286 = vadd.xlane.f32.xlu0 %v285_v0 }
 0x141   :  { %289 = vadd.xlane.f32.xlu1 %v288_v3  ;;  %283 = vadd.xlane.f32.xlu2 %v282_v5 }
 0x17b   :  { %v245_v6 = vpop.xlane.xlu1 %244 }
 0x17c   :  { %1398 = vrcp.f32 %v245_v6  ;;  %v302_v13 = vand.u32 2147483648, %v245_v6  ;;  %vm296_vm3 = vweird.f32 %v245_v6  ;;  %v300_v14 = vand.u32 2147483647, %v245_v6 }
 0x17e   :  { %v303_v21 = vor.u32 1.1754944e-38, %v302_v13  ;;  %vm301_vm5 = vcmp.eq.f32.partialorder %v300_v14, 8.507059e+37 }
 0x182   :  { %v1399_v7 = vpop.eup %1398 }
 0x183   :  { %v292_v8 = vmul.f32 %v1399_v7, %v245_v6  ;;  %v248_v9 = vpop.xlane.xlu2 %247  ;;  %vm297_vm2 = vweird.f32 %v1399_v7 }
 0x184   :  { %1400 = vrcp.f32 %v248_v9  ;;  %vm298_vm4 = vmor %vm296_vm3, %vm297_vm2  ;;  %v317_v30 = vand.u32 2147483648, %v248_v9  ;;  %vm311_vm7 = vweird.f32 %v248_v9  ;;  %v315_v34 = vand.u32 2147483647, %v248_v9 }
 0x185   :  { %v293_v10 = vsub.f32 1.0, %v292_v8 }
 0x186   :  { %v318_v46 = vor.u32 1.1754944e-38, %v317_v30  ;;  %vm316_vm9 = vcmp.eq.f32.partialorder %v315_v34, 8.507059e+37 }
 0x187   :  { %v294_v12 = vmul.f32 %v1399_v7, %v293_v10 }
 0x189   :  { %v295_v16 = vadd.f32 %v1399_v7, %v294_v12 }
 0x18a   :  { %v1401_v17 = vpop.eup %1400 }
 0x18b   :  { %v307_v18 = vmul.f32 %v1401_v17, %v248_v9  ;;  %v257_v19 = vpop.xlane.xlu2 %256  ;;  %v299_v20 = vsel %vm298_vm4, %v1399_v7, %v295_v16  ;;  %vm312_vm6 = vweird.f32 %v1401_v17 }
 0x18c   :  { %1402 = vrcp.f32 %v257_v19  ;;  %v251_v22 = vpop.xlane.xlu0 %250  ;;  %v304_v25 = vsel %vm301_vm5, %v303_v21, %v299_v20  ;;  %vm313_vm8 = vmor %vm311_vm7, %vm312_vm6  ;;  %v362_v41 = vand.u32 2147483648, %v257_v19  ;;  %vm356_vm11 = vweird.f32 %v257_v19 }
 0x18d   :  { %v308_v23 = vsub.f32 1.0, %v307_v18  ;;  %1404 = vrcp.f32 %v251_v22  ;;  %v1673_v28 = vmul.f32 %v1597_v60, %v304_v25  ;;  %v360_v55 = vand.u32 2147483647, %v257_v19 }
 0x18e   :  { %v332_v48 = vand.u32 2147483648, %v251_v22  ;;  %v330_v63 = vand.u32 2147483647, %v251_v22  ;;  %v363_v6 = vor.u32 1.1754944e-38, %v362_v41  ;;  %vm326_vm14 = vweird.f32 %v251_v22 }
 0x18f   :  { %v309_v27 = vmul.f32 %v1401_v17, %v308_v23  ;;  %v533_v31 = vsel %vm146_vm1, %v1673_v28, -inf  ;;  %vm361_vm0 = vcmp.eq.f32.partialorder %v360_v55, 8.507059e+37 }
 0x190   :  { %534 = vmax.xlane.f32.xlu2 %v533_v31  ;;  %v333_v8 = vor.u32 1.1754944e-38, %v332_v48  ;;  %vm331_vm2 = vcmp.eq.f32.partialorder %v330_v63, 8.507059e+37 }
 0x191   :  { %v310_v32 = vadd.f32 %v1401_v17, %v309_v27 }
 0x192   :  { %v1403_v33 = vpop.eup %1402 }
 0x193   :  { %v1405_v38 = vpop.eup %1404  ;;  %v352_v35 = vmul.f32 %v1403_v33, %v257_v19  ;;  %v314_v60 = vsel %vm313_vm8, %v1401_v17, %v310_v32  ;;  %vm357_vm10 = vweird.f32 %v1403_v33 }
 0x194   :  { %v1677_v42 = vpop.xlane.xlu1 %253  ;;  %v322_v44 = vmul.f32 %v1405_v38, %v251_v22  ;;  %v1679_v45 = vpop.xlane.xlu0 %259  ;;  %v319_v50 = vsel %vm316_vm9, %v318_v46, %v314_v60  ;;  %vm1690_vm12 = vmor %vm356_vm11, %vm357_vm10  ;;  %vm327_vm13 = vweird.f32 %v1405_v38 }
 0x195   :  { %v353_v47 = vsub.f32 1.0, %v352_v35  ;;  %1406 = vrcp.f32 %v1679_v45  ;;  %v1683_v52 = vmul.f32 %v1601_v4, %v319_v50  ;;  %vm328_vm15 = vmor %vm326_vm14, %vm327_vm13  ;;  %v375_v23 = vand.u32 2147483647, %v1679_v45 }
 0x196   :  { %v323_v40 = vsub.f32 1.0, %v322_v44  ;;  %1408 = vrcp.f32 %v1677_v42  ;;  %v377_v25 = vand.u32 2147483648, %v1679_v45  ;;  %vm371_vm4 = vweird.f32 %v1679_v45 }
 0x197   :  { %v354_v49 = vmul.f32 %v1403_v33, %v353_v47  ;;  %v536_v56 = vsel %vm146_vm1, %v1683_v52, -inf  ;;  %vm376_vm7 = vcmp.eq.f32.partialorder %v375_v23, 8.507059e+37 }
 0x198   :  { %v324_v51 = vmul.f32 %v1405_v38, %v323_v40  ;;  %537 = vmax.xlane.f32.xlu0 %v536_v56  ;;  %v378_v35 = vor.u32 1.1754944e-38, %v377_v25 }
 0x199   :  { %v355_v54 = vadd.f32 %v1403_v33, %v354_v49 }
 0x19a   :  { %v325_v62 = vadd.f32 %v1405_v38, %v324_v51 }
 0x19b   :  { %v1688_v57 = vpop.eup %1406  ;;  %v359_v5 = vsel %vm1690_vm12, %v1403_v33, %v355_v54 }
 0x19c   :  { %v1694_v4 = vpop.xlane.xlu1 %262  ;;  %v367_v0 = vmul.f32 %v1688_v57, %v1679_v45  ;;  %v1698_v3 = vpop.xlane.xlu0 %268  ;;  %v364_v9 = vsel %vm361_vm0, %v363_v6, %v359_v5  ;;  %v329_v10 = vsel %vm328_vm15, %v1405_v38, %v325_v62  ;;  %vm372_vm3 = vweird.f32 %v1688_v57 }
 0x19d   :  { %1410 = vrcp.f32 %v1694_v4  ;;  %v1704_v12 = vpop.eup %1408  ;;  %v1707_v13 = vmul.f32 %v1606_v11, %v364_v9  ;;  %v334_v16 = vsel %vm331_vm2, %v333_v8, %v329_v10  ;;  %vm373_vm5 = vmor %vm371_vm4, %vm372_vm3  ;;  %vm386_vm6 = vweird.f32 %v1694_v4 }
 0x19e   :  { %1412 = vrcp.f32 %v1698_v3  ;;  %v368_v7 = vsub.f32 1.0, %v367_v0  ;;  %v1715_v19 = vmul.f32 %v1609_v15, %v334_v16  ;;  %v337_v21 = vmul.f32 %v1704_v12, %v1677_v42 }
 0x19f   :  { %v545_v18 = vsel %vm146_vm1, %v1707_v13, -inf  ;;  %vm416_vm8 = vweird.f32 %v1698_v3  ;;  %v420_v44 = vand.u32 2147483647, %v1698_v3  ;;  %v422_v60 = vand.u32 2147483648, %v1698_v3 }
 0x1a0   :  { %v369_v14 = vmul.f32 %v1688_v57, %v368_v7  ;;  %546 = vmax.xlane.f32.xlu0 %v545_v18  ;;  %v539_v15 = vsel %vm146_vm1, %v1715_v19, -inf  ;;  %v338_v38 = vsub.f32 1.0, %v337_v21  ;;  %v390_v40 = vand.u32 2147483647, %v1694_v4 }
 0x1a1   :  { %540 = vmax.xlane.f32.xlu1 %v539_v15  ;;  %v392_v41 = vand.u32 2147483648, %v1694_v4  ;;  %v423_v10 = vor.u32 1.1754944e-38, %v422_v60  ;;  %vm1788_vm11 = vcmp.eq.f32.partialorder %v420_v44, 8.507059e+37 }
 0x1a2   :  { %v370_v32 = vadd.f32 %v1688_v57, %v369_v14  ;;  %v1752_v51 = vmul.f32 %v1704_v12, %v338_v38 }
 0x1a3   :  { %v1710_v17 = vpop.eup %1410 }
 0x1a4   :  { %v1717_v20 = vpop.eup %1412  ;;  %v382_v11 = vmul.f32 %v1710_v17, %v1694_v4  ;;  %v1723_v22 = vpop.xlane.xlu2 %274  ;;  %v374_v46 = vsel %vm373_vm5, %v1688_v57, %v370_v32  ;;  %vm387_vm9 = vweird.f32 %v1710_v17 }
 0x1a5   :  { %v412_v27 = vmul.f32 %v1717_v20, %v1698_v3  ;;  %v1731_v30 = vpop.xlane.xlu0 %277  ;;  %v1733_v31 = vpop.xlane.xlu1 %271  ;;  %v379_v49 = vsel %vm376_vm7, %v378_v35, %v374_v46  ;;  %vm417_vm10 = vweird.f32 %v1717_v20  ;;  %vm1796_vm12 = vmor %vm386_vm6, %vm387_vm9  ;;  %v452_v25 = vand.u32 2147483648, %v1723_v22 }
 0x1a6   :  { %1414 = vrcp.f32 %v1731_v30  ;;  %v383_v34 = vsub.f32 1.0, %v382_v11  ;;  %v1757_v54 = vmul.f32 %v1616_v24, %v379_v49  ;;  %v465_v58 = vand.u32 2147483647, %v1731_v30  ;;  %vm418_vm14 = vmor %vm416_vm8, %vm417_vm10 }
 0x1a7   :  { %v413_v33 = vsub.f32 1.0, %v412_v27  ;;  %1416 = vrcp.f32 %v1723_v22  ;;  %v467_v24 = vand.u32 2147483648, %v1731_v30  ;;  %v437_v63 = vand.u32 2147483648, %v1733_v31 }
 0x1a8   :  { %1418 = vrcp.f32 %v1733_v31  ;;  %v384_v45 = vmul.f32 %v1710_v17, %v383_v34  ;;  %v548_v0 = vsel %vm146_vm1, %v1757_v54, -inf  ;;  %v435_v16 = vand.u32 2147483647, %v1733_v31 }
 0x1a9   :  { %v414_v47 = vmul.f32 %v1717_v20, %v413_v33  ;;  %549 = vmax.xlane.f32.xlu1 %v548_v0  ;;  %v1800_v11 = vor.u32 1.1754944e-38, %v392_v41  ;;  %vm461_vm13 = vweird.f32 %v1731_v30  ;;  %v468_v27 = vor.u32 1.1754944e-38, %v467_v24 }
 0x1aa   :  { %v1783_v9 = vadd.f32 %v1710_v17, %v384_v45  ;;  %vm431_vm15 = vweird.f32 %v1733_v31  ;;  %vm1810_vm0 = vcmp.eq.f32.partialorder %v465_v58, 8.507059e+37  ;;  %v438_v34 = vor.u32 1.1754944e-38, %v437_v63 }
 0x1ab   :  { %v415_v8 = vadd.f32 %v1717_v20, %v414_v47  ;;  %vm1829_vm3 = vcmp.eq.f32.partialorder %v435_v16, 8.507059e+37  ;;  %vm446_vm7 = vweird.f32 %v1723_v22  ;;  %vm1850_vm8 = vcmp.eq.f32.partialorder %v390_v40, 8.507059e+37 }
 0x1ac   :  { %v1749_v50 = vpop.eup %1414  ;;  %v1759_v55 = vpop.xlane.xlu2 %265  ;;  %v389_v3 = vsel %vm1796_vm12, %v1710_v17, %v1783_v9  ;;  %vm342_vm12 = vweird.f32 %v1704_v12  ;;  %v453_v17 = vor.u32 1.1754944e-38, %v452_v25 }
 0x1ad   :  { %v1761_v56 = vpop.eup %1416  ;;  %v457_v57 = vmul.f32 %v1749_v50, %v1731_v30  ;;  %v1767_v48 = vpop.xlane.xlu0 %286  ;;  %1420 = vrcp.f32 %v1759_v55  ;;  %vm462_vm2 = vweird.f32 %v1749_v50  ;;  %v419_v38 = vsel %vm418_vm14, %v1717_v20, %v415_v8 }
 0x1ae   :  { %v1770_v62 = vpop.eup %1418  ;;  %1422 = vrcp.f32 %v1767_v48  ;;  %v1779_v7 = vpop.xlane.xlu1 %280  ;;  %v442_v14 = vmul.f32 %v1761_v56, %v1723_v22  ;;  %v424_v46 = vsel %vm1788_vm11, %v423_v10, %v419_v38  ;;  %vm447_vm4 = vweird.f32 %v1761_v56  ;;  %vm463_vm9 = vmor %vm461_vm13, %vm462_vm2 }
 0x1af   :  { %v458_v5 = vsub.f32 1.0, %v457_v57  ;;  %v427_v6 = vmul.f32 %v1770_v62, %v1733_v31  ;;  %1424 = vrcp.f32 %v1779_v7  ;;  %v1836_v49 = vmul.f32 %v1629_v39, %v424_v46 }
 0x1b0   :  { %v443_v44 = vsub.f32 1.0, %v442_v14  ;;  %vm432_vm5 = vweird.f32 %v1770_v62  ;;  %vm401_vm6 = vweird.f32 %v1759_v55  ;;  %v512_v63 = vand.u32 2147483648, %v1767_v48 }
 0x1b1   :  { %v459_v23 = vmul.f32 %v1749_v50, %v458_v5  ;;  %v428_v15 = vsub.f32 1.0, %v427_v6  ;;  %v407_v0 = vand.u32 2147483648, %v1759_v55  ;;  %v557_v39 = vsel %vm146_vm1, %v1836_v49, -inf  ;;  %vm1872_vm13 = vmor %vm431_vm15, %vm432_vm5 }
 0x1b2   :  { %vm506_vm10 = vweird.f32 %v1767_v48  ;;  %v510_v6 = vand.u32 2147483647, %v1767_v48  ;;  %558 = vmax.xlane.f32.xlu1 %v557_v39  ;;  %v444_v4 = vmul.f32 %v1761_v56, %v443_v44  ;;  %v405_v18 = vand.u32 2147483647, %v1759_v55 }
 0x1b3   :  { %v1814_v33 = vpop.eup %1420  ;;  %v460_v41 = vadd.f32 %v1749_v50, %v459_v23  ;;  %v429_v57 = vmul.f32 %v1770_v62, %v428_v15  ;;  %v513_v44 = vor.u32 1.1754944e-38, %v512_v63  ;;  %v482_v31 = vand.u32 2147483648, %v1779_v7 }
 0x1b4   :  { %v1423_v35 = vpop.eup %1422  ;;  %v397_v60 = vmul.f32 %v1814_v33, %v1759_v55  ;;  %v1827_v47 = vpop.xlane.xlu2 %283  ;;  %vm402_vm11 = vweird.f32 %v1814_v33  ;;  %vm511_vm2 = vcmp.eq.f32.partialorder %v510_v6, 8.507059e+37  ;;  %vm406_vm5 = vcmp.eq.f32.partialorder %v405_v18, 8.507059e+37 }
 0x1b5   :  { %v502_v20 = vmul.f32 %v1423_v35, %v1767_v48  ;;  %1426 = vrcp.f32 %v1827_v47  ;;  %vm507_vm14 = vweird.f32 %v1423_v35  ;;  %v464_v14 = vsel %vm463_vm9, %v1749_v50, %v460_v41  ;;  %v1866_v16 = vpop.eup %1424  ;;  %vm1887_vm15 = vmor %vm401_vm6, %vm402_vm11 }
 0x1b6   :  { %v398_v58 = vsub.f32 1.0, %v397_v60  ;;  %v1863_v10 = vpop.xlane.xlu1 %289  ;;  %v469_v23 = vsel %vm1810_vm0, %v468_v27, %v464_v14  ;;  %v430_v15 = vadd.f32 %v1770_v62, %v429_v57  ;;  %v408_v60 = vor.u32 1.1754944e-38, %v407_v0  ;;  %vm508_vm0 = vmor %vm506_vm10, %vm507_vm14 }
 0x1b7   :  { %v503_v24 = vsub.f32 1.0, %v502_v20  ;;  %v1892_v46 = vmul.f32 %v1638_v29, %v469_v23  ;;  %1428 = vrcp.f32 %v1863_v10  ;;  %v472_v57 = vmul.f32 %v1866_v16, %v1779_v7 }
 0x1b8   :  { %v399_v8 = vmul.f32 %v1814_v33, %v398_v58  ;;  %v434_v55 = vsel %vm1872_vm13, %v1770_v62, %v430_v15  ;;  %v450_v62 = vand.u32 2147483647, %v1723_v22  ;;  %v445_v45 = vadd.f32 %v1761_v56, %v444_v4 }
 0x1b9   :  { %v504_v40 = vmul.f32 %v1423_v35, %v503_v24  ;;  %v566_v20 = vsel %vm146_vm1, %v1892_v46, -inf  ;;  %v439_v29 = vsel %vm1829_vm3, %v438_v34, %v434_v55  ;;  %vm1921_vm3 = vmor %vm446_vm7, %vm447_vm4  ;;  %v394_v34 = vsel %vm1850_vm8, %v1800_v11, %v389_v3 }
 0x1ba   :  { %v400_v38 = vadd.f32 %v1814_v33, %v399_v8  ;;  %v1913_v24 = vmul.f32 %v1640_v43, %v439_v29  ;;  %567 = vmax.xlane.f32.xlu1 %v566_v20  ;;  %v449_v21 = vsel %vm1921_vm3, %v1761_v56, %v445_v45  ;;  %v473_v9 = vsub.f32 1.0, %v472_v57 }
 0x1bb   :  { %v1881_v50 = vpop.eup %1426  ;;  %v505_v27 = vadd.f32 %v1423_v35, %v504_v40  ;;  %v340_v11 = vadd.f32 %v1704_v12, %v1752_v51  ;;  %vm451_vm4 = vcmp.eq.f32.partialorder %v450_v62, 8.507059e+37  ;;  %vm341_vm6 = vweird.f32 %v1677_v42 }
 0x1bc   :  { %v487_v32 = vmul.f32 %v1881_v50, %v1827_v47  ;;  %v404_v48 = vsel %vm1887_vm15, %v1814_v33, %v400_v38  ;;  %v560_v43 = vsel %vm146_vm1, %v1913_v24, -inf  ;;  %v345_v56 = vand.u32 2147483647, %v1677_v42  ;;  %vm1960_vm7 = vmor %vm341_vm6, %vm342_vm12 }
 0x1bd   :  { %v509_v41 = vsel %vm508_vm0, %v1423_v35, %v505_v27  ;;  %v409_v0 = vsel %vm406_vm5, %v408_v60, %v404_v48  ;;  %561 = vmax.xlane.f32.xlu2 %v560_v43  ;;  %v1945_v8 = vpop.eup %1428  ;;  %v1958_v3 = vmul.f32 %v1626_v37, %v394_v34  ;;  %v454_v22 = vsel %vm451_vm4, %v453_v17, %v449_v21 }
 0x1be   :  { %v488_v58 = vsub.f32 1.0, %v487_v32  ;;  %v514_v63 = vsel %vm511_vm2, %v513_v44, %v509_v41  ;;  %v1940_v6 = vmul.f32 %v1654_v61, %v409_v0  ;;  %vm492_vm8 = vweird.f32 %v1881_v50 }
 0x1bf   :  { %v1937_v39 = vmul.f32 %v1656_v36, %v514_v63  ;;  %v347_v36 = vand.u32 2147483648, %v1677_v42  ;;  %v474_v4 = vmul.f32 %v1866_v16, %v473_v9  ;;  %v497_v42 = vand.u32 2147483648, %v1827_v47 }
 0x1c0   :  { %v489_v35 = vmul.f32 %v1881_v50, %v488_v58  ;;  %v554_v61 = vsel %vm146_vm1, %v1940_v6, -inf  ;;  %v517_v37 = vmul.f32 %v1945_v8, %v1863_v10  ;;  %v344_v40 = vsel %vm1960_vm7, %v1704_v12, %v340_v11 }
 0x1c1   :  { %555 = vmax.xlane.f32.xlu0 %v554_v61  ;;  %v575_v51 = vsel %vm146_vm1, %v1937_v39, -inf  ;;  %v348_v14 = vor.u32 1.1754944e-38, %v347_v36  ;;  %vm491_vm9 = vweird.f32 %v1827_v47  ;;  %v495_v30 = vand.u32 2147483647, %v1827_v47 }
 0x1c2   :  { %v490_v5 = vadd.f32 %v1881_v50, %v489_v35  ;;  %v1978_v18 = vmul.f32 %v1643_v53, %v454_v22  ;;  %vm1980_vm10 = vmor %vm491_vm9, %vm492_vm8  ;;  %576 = vmax.xlane.f32.xlu1 %v575_v51  ;;  %v551_v15 = vsel %vm146_vm1, %v1958_v3, -inf  ;;  %vm346_vm11 = vcmp.eq.f32.partialorder %v345_v56, 8.507059e+37 }
 0x1c3   :  { %v349_v38 = vsel %vm346_vm11, %v348_v14, %v344_v40  ;;  %vm477_vm14 = vweird.f32 %v1866_v16  ;;  %v498_v47 = vor.u32 1.1754944e-38, %v497_v42  ;;  %v518_v53 = vsub.f32 1.0, %v517_v37 }
 0x1c4   :  { %v494_v12 = vsel %vm1980_vm10, %v1881_v50, %v490_v5  ;;  %v475_v44 = vadd.f32 %v1866_v16, %v474_v4  ;;  %v563_v60 = vsel %vm146_vm1, %v1978_v18, -inf  ;;  %vm496_vm13 = vcmp.eq.f32.partialorder %v495_v30, 8.507059e+37 }
 0x1c5   :  { %552 = vmax.xlane.f32.xlu2 %v551_v15  ;;  %vm476_vm15 = vweird.f32 %v1779_v7  ;;  %v480_v27 = vand.u32 2147483647, %v1779_v7  ;;  %v1997_v32 = vmul.f32 %v1619_v26, %v349_v38  ;;  %v499_v50 = vsel %vm496_vm13, %v498_v47, %v494_v12 }
 0x1c6   :  { %vm478_vm0 = vmor %vm476_vm15, %vm477_vm14  ;;  %v519_v55 = vmul.f32 %v1945_v8, %v518_v53  ;;  %v483_v29 = vor.u32 1.1754944e-38, %v482_v31  ;;  %v2002_v41 = vmul.f32 %v1666_v2, %v499_v50  ;;  %vm522_vm5 = vweird.f32 %v1945_v8 }
 0x1c7   :  { %v479_v20 = vsel %vm478_vm0, %v1866_v16, %v475_v44  ;;  %v542_v48 = vsel %vm146_vm1, %v1997_v32, -inf  ;;  %vm481_vm2 = vcmp.eq.f32.partialorder %v480_v27, 8.507059e+37  ;;  %v527_v57 = vand.u32 2147483648, %v1863_v10 }
 0x1c8   :  { %v484_v7 = vsel %vm481_vm2, %v483_v29, %v479_v20  ;;  %v520_v26 = vadd.f32 %v1945_v8, %v519_v55  ;;  %v572_v58 = vsel %vm146_vm1, %v2002_v41, -inf  ;;  %vm521_vm3 = vweird.f32 %v1863_v10 }
 0x1c9   :  { %564 = vmax.xlane.f32.xlu0 %v563_v60  ;;  %v525_v2 = vand.u32 2147483647, %v1863_v10  ;;  %v2014_v16 = vmul.f32 %v1652_v59, %v484_v7  ;;  %vm523_vm12 = vmor %vm521_vm3, %vm522_vm5  ;;  %v528_v63 = vor.u32 1.1754944e-38, %v527_v57  ;;  %v531_v43 = vlaneseq }
 0x1ca   :  { %v524_v62 = vsel %vm523_vm12, %v1945_v8, %v520_v26 }
 0x1cb   :  { %v569_v0 = vsel %vm146_vm1, %v2014_v16, -inf  ;;  %vm526_vm4 = vcmp.eq.f32.partialorder %v525_v2, 8.507059e+37  ;;  %v2024_v59 = vand.u32 127, %v531_v43 }
 0x1cc   :  { %v529_v45 = vsel %vm526_vm4, %v528_v63, %v524_v62 }
 0x1cd   :  { %543 = vmax.xlane.f32.xlu2 %v542_v48  ;;  %v2020_v33 = vmul.f32 %v1664_v1, %v529_v45 }
 0x1cf   :  { %v578_v10 = vsel %vm146_vm1, %v2020_v33, -inf }
 0x1d1   :  { %573 = vmax.xlane.f32.xlu0 %v572_v58 }
 0x1d5   :  { %570 = vmax.xlane.f32.xlu2 %v569_v0 }
 0x1dd   :  { %579 = vmax.xlane.f32.xlu2 %v578_v10 }
 0x203   :  { %v2026_v34 = vpop.xlane.xlu2 %534 }
 0x204   :  { %2866 = vst [vmem:[#allocation5_spill] sm:$0xff] %v2026_v34  ;;  %vm581_vm6 = vcmp.eq.f32.partialorder %v1673_v28, %v2026_v34 }
 0x205   :  { %v597_v35 = vsel %vm581_vm6, %v2024_v59, 16 }
 0x206   :  { %v2032_v21 = vsel %vm146_vm1, %v597_v35, 2147483647 }
 0x207   :  { %v615_v1 = vshra.s32 %v2032_v21, 16 }
 0x209   :  { %v2035_v8 = vcvt.s32.f32 %v615_v1 }
 0x20b   :  { %618 = vmin.xlane.f32.xlu0 %v2035_v8  ;;  %v2038_v17 = vpop.xlane.xlu0 %537 }
 0x20c   :  { %vm582_vm7 = vcmp.eq.f32.partialorder %v1683_v52, %v2038_v17 }
 0x20d   :  { %v598_v56 = vsel %vm582_vm7, %v2024_v59, 16 }
 0x20e   :  { %v2064_v42 = vsel %vm146_vm1, %v598_v56, 2147483647 }
 0x20f   :  { %v630_v40 = vshra.s32 %v2064_v42, 16 }
 0x211   :  { %v2071_v14 = vcvt.s32.f32 %v630_v40 }
 0x213   :  { %v2040_v9 = vpop.xlane.xlu0 %546 }
 0x214   :  { %vm585_vm8 = vcmp.eq.f32.partialorder %v1707_v13, %v2040_v9  ;;  %v2047_v36 = vpop.xlane.xlu1 %540 }
 0x215   :  { %v601_v11 = vsel %vm585_vm8, %v2024_v59, 16  ;;  %vm583_vm9 = vcmp.eq.f32.partialorder %v1715_v19, %v2047_v36 }
 0x216   :  { %v2052_v61 = vsel %vm146_vm1, %v601_v11, 2147483647  ;;  %v599_v22 = vsel %vm583_vm9, %v2024_v59, 16 }
 0x217   :  { %v675_v25 = vshra.s32 %v2052_v61, 16  ;;  %v2058_v51 = vsel %vm146_vm1, %v599_v22, 2147483647 }
 0x218   :  { %v645_v4 = vshra.s32 %v2058_v51, 16 }
 0x219   :  { %v2060_v5 = vcvt.s32.f32 %v675_v25 }
 0x21a   :  { %v2067_v37 = vcvt.s32.f32 %v645_v4 }
 0x21b   :  { %678 = vmin.xlane.f32.xlu2 %v2060_v5 }
 0x21c   :  { %648 = vmin.xlane.f32.xlu1 %v2067_v37  ;;  %v2084_v38 = vpop.xlane.xlu1 %549 }
 0x21d   :  { %vm586_vm13 = vcmp.eq.f32.partialorder %v1757_v54, %v2084_v38 }
 0x21e   :  { %v602_v2 = vsel %vm586_vm13, %v2024_v59, 16 }
 0x21f   :  { %v2142_v11 = vsel %vm146_vm1, %v602_v2, 2147483647 }
 0x220   :  { %v690_v4 = vshra.s32 %v2142_v11, 16 }
 0x223   :  { %633 = vmin.xlane.f32.xlu2 %v2071_v14 }
 0x225   :  { %v2124_v62 = vpop.xlane.xlu1 %558 }
 0x226   :  { %vm589_vm5 = vcmp.eq.f32.partialorder %v1836_v49, %v2124_v62 }
 0x230   :  { %v2074_v30 = vpop.xlane.xlu2 %561 }
 0x231   :  { %2867 = vst [vmem:[#allocation6_spill] sm:$0xff] %v2074_v30  ;;  %vm590_vm10 = vcmp.eq.f32.partialorder %v1913_v24, %v2074_v30 }
 0x232   :  { %v606_v44 = vsel %vm590_vm10, %v2024_v59, 16 }
 0x233   :  { %v2104_v20 = vsel %vm146_vm1, %v606_v44, 2147483647  ;;  %v605_v44 = vsel %vm589_vm5, %v2024_v59, 16 }
 0x234   :  { %v2076_v23 = vpop.xlane.xlu0 %555  ;;  %v750_v26 = vshra.s32 %v2104_v20, 16  ;;  %v2173_v2 = vsel %vm146_vm1, %v605_v44, 2147483647 }
 0x235   :  { %vm588_vm0 = vcmp.eq.f32.partialorder %v1940_v6, %v2076_v23 }
 0x236   :  { %v2134_v10 = vcvt.s32.f32 %v750_v26  ;;  %v604_v35 = vsel %vm588_vm0, %v2024_v59, 16  ;;  %v2170_v26 = vcvt.s32.f32 %v690_v4 }
 0x237   :  { %v2157_v40 = vsel %vm146_vm1, %v604_v35, 2147483647 }
 0x238   :  { %v2078_v15 = vpop.xlane.xlu2 %552 }
 0x239   :  { %vm587_vm11 = vcmp.eq.f32.partialorder %v1958_v3, %v2078_v15 }
 0x23a   :  { %v603_v12 = vsel %vm587_vm11, %v2024_v59, 16 }
 0x23b   :  { %v2090_v53 = vsel %vm146_vm1, %v603_v12, 2147483647 }
 0x23c   :  { %v2087_v47 = vpop.xlane.xlu0 %564  ;;  %v705_v31 = vshra.s32 %v2090_v53, 16 }
 0x23d   :  { %vm591_vm14 = vcmp.eq.f32.partialorder %v1978_v18, %v2087_v47 }
 0x23e   :  { %v607_v60 = vsel %vm591_vm14, %v2024_v59, 16  ;;  %v2097_v27 = vcvt.s32.f32 %v705_v31 }
 0x23f   :  { %v2100_v50 = vsel %vm146_vm1, %v607_v60, 2147483647  ;;  %v720_v60 = vshra.s32 %v2157_v40, 16 }
 0x240   :  { %v765_v55 = vshra.s32 %v2100_v50, 16  ;;  %v2106_v29 = vpop.xlane.xlu2 %543  ;;  %708 = vmin.xlane.f32.xlu1 %v2097_v27 }
 0x241   :  { %vm584_vm15 = vcmp.eq.f32.partialorder %v1997_v32, %v2106_v29 }
 0x242   :  { %v2113_v48 = vcvt.s32.f32 %v765_v55  ;;  %v600_v7 = vsel %vm584_vm15, %v2024_v59, 16  ;;  %v2166_v55 = vpop.xlane.xlu1 %567 }
 0x243   :  { %v2120_v58 = vsel %vm146_vm1, %v600_v7, 2147483647  ;;  %2870 = vst [vmem:[#allocation9_spill] sm:$0xff] %v2166_v55  ;;  %vm592_vm12 = vcmp.eq.f32.partialorder %v1892_v46, %v2166_v55  ;;  %v644_v55 = vand.u32 65535, %v2058_v51 }
 0x244   :  { %v2117_v57 = vpop.xlane.xlu0 %573  ;;  %768 = vmin.xlane.f32.xlu2 %v2113_v48  ;;  %v660_v63 = vshra.s32 %v2120_v58, 16  ;;  %v608_v35 = vsel %vm592_vm12, %v2024_v59, 16 }
 0x245   :  { %2868 = vst [vmem:[#allocation7_spill] sm:$0xff] %v2117_v57  ;;  %vm594_vm2 = vcmp.eq.f32.partialorder %v2002_v41, %v2117_v57  ;;  %v646_v57 = vcvt.s32.f32 %v644_v55 }
 0x246   :  { %v610_v0 = vsel %vm594_vm2, %v2024_v59, 16  ;;  %v2132_v45 = vcvt.s32.f32 %v660_v63  ;;  %v2179_v63 = vcvt.s32.f32 %v720_v60 }
 0x247   :  { %v2137_v43 = vsel %vm146_vm1, %v610_v0, 2147483647  ;;  %v735_v0 = vshra.s32 %v2173_v2, 16 }
 0x248   :  { %v810_v1 = vshra.s32 %v2137_v43, 16  ;;  %663 = vmin.xlane.f32.xlu0 %v2132_v45  ;;  %v2145_v56 = vpop.xlane.xlu2 %570  ;;  %753 = vmin.xlane.f32.xlu1 %v2134_v10 }
 0x249   :  { %2869 = vst [vmem:[#allocation8_spill] sm:$0xff] %v2145_v56  ;;  %vm593_vm3 = vcmp.eq.f32.partialorder %v2014_v16, %v2145_v56 }
 0x24a   :  { %v2152_v22 = vcvt.s32.f32 %v810_v1  ;;  %v609_v25 = vsel %vm593_vm3, %v2024_v59, 16  ;;  %v2184_v1 = vcvt.s32.f32 %v735_v0  ;;  %v2201_v34 = vpop.xlane.xlu1 %576 }
 0x24b   :  { %v2161_v12 = vsel %vm146_vm1, %v609_v25, 2147483647  ;;  %v2187_v25 = vsel %vm146_vm1, %v608_v35, 2147483647  ;;  %2871 = vst [vmem:[#allocation10_spill] sm:$0xff] %v2201_v34  ;;  %vm595_vm7 = vcmp.eq.f32.partialorder %v1937_v39, %v2201_v34 }
 0x24c   :  { %813 = vmin.xlane.f32.xlu2 %v2152_v22  ;;  %v795_v31 = vshra.s32 %v2161_v12, 16  ;;  %v780_v4 = vshra.s32 %v2187_v25, 16 }
 0x24e   :  { %v2168_v7 = vcvt.s32.f32 %v795_v31  ;;  %v2191_v44 = vcvt.s32.f32 %v780_v4  ;;  %v614_v31 = vand.u32 65535, %v2032_v21 }
 0x250   :  { %798 = vmin.xlane.f32.xlu1 %v2168_v7  ;;  %693 = vmin.xlane.f32.xlu0 %v2170_v26  ;;  %v616_v56 = vcvt.s32.f32 %v614_v31  ;;  %v2199_v35 = vpop.xlane.xlu2 %579  ;;  %v611_v31 = vsel %vm595_vm7, %v2024_v59, 16 }
 0x251   :  { %vm596_vm10 = vcmp.eq.f32.partialorder %v2020_v33, %v2199_v35 }
 0x254   :  { %723 = vmin.xlane.f32.xlu2 %v2179_v63 }
 0x258   :  { %738 = vmin.xlane.f32.xlu0 %v2184_v1 }
 0x260   :  { %783 = vmin.xlane.f32.xlu0 %v2191_v44 }
 0x27e   :  { %v2195_v60 = vpop.xlane.xlu0 %618 }
 0x27f   :  { %vm620_vm4 = vcmp.eq.f32.partialorder %v2035_v8, %v2195_v60  ;;  %v629_v8 = vand.u32 65535, %v2064_v42 }
 0x280   :  { %v621_v0 = vsel %vm620_vm4, %v616_v56, inf  ;;  %v674_v56 = vand.u32 65535, %v2052_v61 }
 0x281   :  { %622 = vmin.xlane.f32.xlu1 %v621_v0  ;;  %v631_v0 = vcvt.s32.f32 %v629_v8  ;;  %v764_v8 = vand.u32 65535, %v2100_v50 }
 0x282   :  { %v676_v55 = vcvt.s32.f32 %v674_v56 }
 0x283   :  { %v766_v34 = vcvt.s32.f32 %v764_v8 }
 0x28e   :  { %v2204_v4 = vpop.xlane.xlu2 %678 }
 0x28f   :  { %v2206_v30 = vpop.xlane.xlu1 %648  ;;  %vm680_vm9 = vcmp.eq.f32.partialorder %v2060_v5, %v2204_v4  ;;  %v659_v5 = vand.u32 65535, %v2120_v58  ;;  %v689_v58 = vand.u32 65535, %v2142_v11 }
 0x290   :  { %vm650_vm6 = vcmp.eq.f32.partialorder %v2067_v37, %v2206_v30  ;;  %v681_v42 = vsel %vm680_vm9, %v676_v55, inf }
 0x291   :  { %v651_v21 = vsel %vm650_vm6, %v646_v57, inf  ;;  %v2222_v57 = vsel %vm146_vm1, %v611_v31, 2147483647  ;;  %v612_v31 = vsel %vm596_vm10, %v2024_v59, 16 }
 0x292   :  { %652 = vmin.xlane.f32.xlu2 %v651_v21  ;;  %v825_v61 = vshra.s32 %v2222_v57, 16  ;;  %v2242_v55 = vsel %vm146_vm1, %v612_v31, 2147483647 }
 0x294   :  { %v2225_v21 = vcvt.s32.f32 %v825_v61 }
 0x296   :  { %v2215_v51 = vpop.xlane.xlu2 %633 }
 0x297   :  { %vm635_vm8 = vcmp.eq.f32.partialorder %v2071_v14, %v2215_v51 }
 0x298   :  { %v636_v37 = vsel %vm635_vm8, %v631_v0, inf }
 0x299   :  { %637 = vmin.xlane.f32.xlu0 %v636_v37  ;;  %v661_v37 = vcvt.s32.f32 %v659_v5  ;;  %v691_v5 = vcvt.s32.f32 %v689_v58 }
 0x29a   :  { %682 = vmin.xlane.f32.xlu2 %v681_v42 }
 0x2a1   :  { %828 = vmin.xlane.f32.xlu0 %v2225_v21 }
 0x2b3   :  { %v2249_v61 = vpop.xlane.xlu1 %708 }
 0x2b4   :  { %vm710_vm0 = vcmp.eq.f32.partialorder %v2097_v27, %v2249_v61  ;;  %v779_v27 = vand.u32 65535, %v2187_v25 }
 0x2b7   :  { %v2229_v14 = vpop.xlane.xlu2 %768 }
 0x2b8   :  { %vm770_vm11 = vcmp.eq.f32.partialorder %v2113_v48, %v2229_v14  ;;  %v719_v48 = vand.u32 65535, %v2157_v40  ;;  %v704_v40 = vand.u32 65535, %v2090_v53 }
 0x2b9   :  { %v771_v56 = vsel %vm770_vm11, %v766_v34, inf  ;;  %v840_v34 = vshra.s32 %v2242_v55, 16 }
 0x2ba   :  { %772 = vmin.xlane.f32.xlu2 %v771_v56  ;;  %v721_v11 = vcvt.s32.f32 %v719_v48 }
 0x2bb   :  { %v2237_v0 = vpop.xlane.xlu0 %663  ;;  %v2253_v56 = vcvt.s32.f32 %v840_v34 }
 0x2bc   :  { %vm665_vm14 = vcmp.eq.f32.partialorder %v2132_v45, %v2237_v0 }
 0x2bd   :  { %v666_v50 = vsel %vm665_vm14, %v661_v37, inf  ;;  %v734_v37 = vand.u32 65535, %v2173_v2  ;;  %v2271_v2 = vpop.xlane.xlu1 %753 }
 0x2be   :  { %667 = vmin.xlane.f32.xlu1 %v666_v50  ;;  %vm755_vm3 = vcmp.eq.f32.partialorder %v2134_v10, %v2271_v2 }
 0x2bf   :  { %v2244_v42 = vpop.xlane.xlu2 %813  ;;  %v736_v34 = vcvt.s32.f32 %v734_v37 }
 0x2c0   :  { %vm815_vm5 = vcmp.eq.f32.partialorder %v2152_v22, %v2244_v42 }
 0x2c3   :  { %v2251_v8 = vpop.xlane.xlu0 %693 }
 0x2c4   :  { %vm695_vm13 = vcmp.eq.f32.partialorder %v2170_v26, %v2251_v8  ;;  %v809_v26 = vand.u32 65535, %v2137_v43  ;;  %v749_v43 = vand.u32 65535, %v2104_v20  ;;  %v794_v20 = vand.u32 65535, %v2161_v12 }
 0x2c5   :  { %v696_v45 = vsel %vm695_vm13, %v691_v5, inf  ;;  %v706_v5 = vcvt.s32.f32 %v704_v40 }
 0x2c6   :  { %843 = vmin.xlane.f32.xlu1 %v2253_v56  ;;  %697 = vmin.xlane.f32.xlu0 %v696_v45  ;;  %v811_v53 = vcvt.s32.f32 %v809_v26  ;;  %v751_v37 = vcvt.s32.f32 %v749_v43  ;;  %v796_v25 = vcvt.s32.f32 %v794_v20  ;;  %v625_v26 = vcvt.f32.s32 %v2195_v60 }
 0x2c7   :  { %v2258_v31 = vpop.xlane.xlu2 %723  ;;  %v824_v43 = vand.u32 65535, %v2222_v57 }
 0x2c8   :  { %vm725_vm15 = vcmp.eq.f32.partialorder %v2179_v63, %v2258_v31  ;;  %v711_v63 = vsel %vm710_vm0, %v706_v5, inf  ;;  %v816_v45 = vsel %vm815_vm5, %v811_v53, inf  ;;  %v756_v40 = vsel %vm755_vm3, %v751_v37, inf }
 0x2c9   :  { %v726_v50 = vsel %vm725_vm15, %v721_v11, inf  ;;  %v781_v11 = vcvt.s32.f32 %v779_v27  ;;  %v626_v5 = vshll.u32 %v625_v26, 16  ;;  %v640_v27 = vcvt.f32.s32 %v2215_v51 }
 0x2ca   :  { %727 = vmin.xlane.f32.xlu2 %v726_v50  ;;  %v2283_v50 = vpop.xlane.xlu1 %798 }
 0x2cb   :  { %v2267_v58 = vpop.xlane.xlu0 %738  ;;  %vm800_vm4 = vcmp.eq.f32.partialorder %v2168_v7, %v2283_v50 }
 0x2cc   :  { %vm740_vm2 = vcmp.eq.f32.partialorder %v2184_v1, %v2267_v58  ;;  %v801_v10 = vsel %vm800_vm4, %v796_v25, inf }
 0x2cd   :  { %v741_v48 = vsel %vm740_vm2, %v736_v34, inf }
 0x2ce   :  { %742 = vmin.xlane.f32.xlu0 %v741_v48  ;;  %712 = vmin.xlane.f32.xlu1 %v711_v63 }
 0x2d2   :  { %817 = vmin.xlane.f32.xlu2 %v816_v45  ;;  %v641_v45 = vshll.u32 %v640_v27, 16  ;;  %v730_v27 = vcvt.f32.s32 %v2258_v31 }
 0x2d3   :  { %v2279_v1 = vpop.xlane.xlu0 %783 }
 0x2d4   :  { %vm785_vm12 = vcmp.eq.f32.partialorder %v2191_v44, %v2279_v1 }
 0x2d5   :  { %v786_v22 = vsel %vm785_vm12, %v781_v11, inf }
 0x2d6   :  { %787 = vmin.xlane.f32.xlu0 %v786_v22  ;;  %757 = vmin.xlane.f32.xlu1 %v756_v40  ;;  %v826_v22 = vcvt.s32.f32 %v824_v43 }
 0x2de   :  { %802 = vmin.xlane.f32.xlu1 %v801_v10 }
 0x2f4   :  { %v623_v34 = vpop.xlane.xlu1 %622 }
 0x2f5   :  { %v624_v48 = vcvt.f32.s32 %v623_v34 }
 0x2f7   :  { %v2289_v44 = vadd.s32 %v626_v5, %v624_v48 }
 0x2f9   :  { %vm869_vm6 = vcmp.eq.s32.totalorder %v2024_v59, %v2289_v44 }
 0x2fa   :  { %v2294_v63 = vsel %vm869_vm6, -inf, %v1673_v28  ;;  %v685_v28 = vcvt.f32.s32 %v2204_v4 }
 0x2fb   :  { %v901_v12 = vsel %vm146_vm1, %v2294_v63, -inf }
 0x2fc   :  { %902 = vmax.xlane.f32.xlu2 %v901_v12  ;;  %v686_v51 = vshll.u32 %v685_v28, 16  ;;  %v839_v12 = vand.u32 65535, %v2242_v55 }
 0x305   :  { %v653_v7 = vpop.xlane.xlu2 %652 }
 0x306   :  { %v654_v48 = vcvt.f32.s32 %v653_v7  ;;  %v731_v7 = vshll.u32 %v730_v27, 16 }
 0x30c   :  { %v638_v53 = vpop.xlane.xlu0 %637 }
 0x30d   :  { %v639_v60 = vcvt.f32.s32 %v638_v53  ;;  %v683_v40 = vpop.xlane.xlu2 %682 }
 0x30e   :  { %v684_v25 = vcvt.f32.s32 %v683_v40 }
 0x30f   :  { %v2300_v11 = vadd.s32 %v641_v45, %v639_v60 }
 0x310   :  { %v2312_v10 = vadd.s32 %v686_v51, %v684_v25  ;;  %v715_v25 = vcvt.f32.s32 %v2249_v61 }
 0x311   :  { %vm870_vm8 = vcmp.eq.s32.totalorder %v2024_v59, %v2300_v11 }
 0x312   :  { %v2310_v57 = vsel %vm870_vm8, -inf, %v1683_v52  ;;  %vm873_vm9 = vcmp.eq.s32.totalorder %v2024_v59, %v2312_v10  ;;  %v655_v52 = vcvt.f32.s32 %v2206_v30  ;;  %v700_v30 = vcvt.f32.s32 %v2251_v8 }
 0x313   :  { %v904_v26 = vsel %vm146_vm1, %v2310_v57, -inf  ;;  %v2319_v4 = vsel %vm873_vm9, -inf, %v1707_v13  ;;  %v841_v13 = vcvt.s32.f32 %v839_v12  ;;  %v716_v12 = vshll.u32 %v715_v25, 16 }
 0x314   :  { %v2302_v37 = vpop.xlane.xlu0 %828  ;;  %v656_v53 = vshll.u32 %v655_v52, 16  ;;  %vm1237_vm9 = vcmask 7168  }
 0x315   :  { %vm830_vm7 = vcmp.eq.f32.partialorder %v2225_v21, %v2302_v37  ;;  %v913_v21 = vsel %vm146_vm1, %v2319_v4, -inf }
 0x316   :  { %v831_v20 = vsel %vm830_vm7, %v826_v22, inf  ;;  %v2326_v60 = vadd.s32 %v656_v53, %v654_v48  ;;  %v775_v22 = vcvt.f32.s32 %v2229_v14  ;;  %v670_v14 = vcvt.f32.s32 %v2237_v0 }
 0x317   :  { %832 = vmin.xlane.f32.xlu0 %v831_v20  ;;  %v820_v0 = vcvt.f32.s32 %v2244_v42 }
 0x318   :  { %vm871_vm11 = vcmp.eq.s32.totalorder %v2024_v59, %v2326_v60  ;;  %v776_v51 = vshll.u32 %v775_v22, 16  ;;  %v671_v22 = vshll.u32 %v670_v14, 16 }
 0x319   :  { %v2341_v8 = vsel %vm871_vm11, -inf, %v1715_v19  ;;  %v745_v19 = vcvt.f32.s32 %v2267_v58  ;;  %v821_v42 = vshll.u32 %v820_v0, 16  ;;  %v805_v0 = vcvt.f32.s32 %v2283_v50 }
 0x31b   :  { %v746_v58 = vshll.u32 %v745_v19, 16 }
 0x31f   :  { %905 = vmax.xlane.f32.xlu0 %v904_v26  ;;  %v701_v26 = vshll.u32 %v700_v30, 16 }
 0x327   :  { %914 = vmax.xlane.f32.xlu0 %v913_v21 }
 0x32d   :  { %v773_v5 = vpop.xlane.xlu2 %772 }
 0x32e   :  { %v774_v28 = vcvt.f32.s32 %v773_v5 }
 0x331   :  { %v668_v34 = vpop.xlane.xlu1 %667 }
 0x332   :  { %v669_v61 = vcvt.f32.s32 %v668_v34 }
 0x339   :  { %v698_v43 = vpop.xlane.xlu0 %697  ;;  %v2328_v45 = vpop.xlane.xlu1 %843 }
 0x33a   :  { %vm845_vm10 = vcmp.eq.f32.partialorder %v2253_v56, %v2328_v45  ;;  %v699_v20 = vcvt.f32.s32 %v698_v43  ;;  %v2343_v56 = vadd.s32 %v776_v51, %v774_v28  ;;  %v907_v43 = vsel %vm146_vm1, %v2341_v8, -inf }
 0x33b   :  { %v846_v40 = vsel %vm845_vm10, %v841_v13, inf  ;;  %v760_v28 = vcvt.f32.s32 %v2271_v2  ;;  %v790_v2 = vcvt.f32.s32 %v2279_v1  ;;  %vm1254_vm10 = vcmask 15360  }
 0x33c   :  { %847 = vmin.xlane.f32.xlu1 %v846_v40  ;;  %v2345_v52 = vadd.s32 %v701_v26, %v699_v20  ;;  %vm879_vm15 = vcmp.eq.s32.totalorder %v2024_v59, %v2343_v56 }
 0x33d   :  { %v728_v55 = vpop.xlane.xlu2 %727  ;;  %v2378_v25 = vsel %vm879_vm15, -inf, %v1978_v18 }
 0x33e   :  { %v729_v31 = vcvt.f32.s32 %v728_v55  ;;  %vm874_vm13 = vcmp.eq.s32.totalorder %v2024_v59, %v2345_v52  ;;  %v931_v18 = vsel %vm146_vm1, %v2378_v25, -inf }
 0x340   :  { %v2337_v21 = vadd.s32 %v731_v7, %v729_v31  ;;  %v2375_v31 = vsel %vm874_vm13, -inf, %v1757_v54 }
 0x341   :  { %v743_v5 = vpop.xlane.xlu0 %742  ;;  %v713_v48 = vpop.xlane.xlu1 %712  ;;  %v916_v54 = vsel %vm146_vm1, %v2375_v31, -inf }
 0x342   :  { %vm876_vm14 = vcmp.eq.s32.totalorder %v2024_v59, %v2337_v21  ;;  %v714_v53 = vcvt.f32.s32 %v713_v48  ;;  %v744_v40 = vcvt.f32.s32 %v743_v5  ;;  %v761_v48 = vshll.u32 %v760_v28, 16 }
 0x343   :  { %v2350_v27 = vsel %vm876_vm14, -inf, %v1940_v6  ;;  %v2364_v6 = vadd.s32 %v671_v22, %v669_v61 }
 0x344   :  { %v922_v13 = vsel %vm146_vm1, %v2350_v27, -inf  ;;  %v2358_v30 = vadd.s32 %v716_v12, %v714_v53  ;;  %908 = vmax.xlane.f32.xlu1 %v907_v43  ;;  %v2380_v51 = vadd.s32 %v746_v58, %v744_v40  ;;  %v791_v53 = vshll.u32 %v790_v2, 16 }
 0x345   :  { %923 = vmax.xlane.f32.xlu0 %v922_v13  ;;  %v818_v34 = vpop.xlane.xlu2 %817  ;;  %vm872_vm2 = vcmp.eq.s32.totalorder %v2024_v59, %v2364_v6 }
 0x346   :  { %v819_v7 = vcvt.f32.s32 %v818_v34  ;;  %vm875_vm0 = vcmp.eq.s32.totalorder %v2024_v59, %v2358_v30  ;;  %v2392_v61 = vsel %vm872_vm2, -inf, %v1997_v32  ;;  %vm877_vm5 = vcmp.eq.s32.totalorder %v2024_v59, %v2380_v51 }
 0x347   :  { %v2369_v55 = vsel %vm875_vm0, -inf, %v1958_v3  ;;  %v910_v19 = vsel %vm146_vm1, %v2392_v61, -inf  ;;  %v2404_v43 = vsel %vm877_vm5, -inf, %v1836_v49 }
 0x348   :  { %v919_v20 = vsel %vm146_vm1, %v2369_v55, -inf  ;;  %v2382_v26 = vadd.s32 %v821_v42, %v819_v7  ;;  %v925_v50 = vsel %vm146_vm1, %v2404_v43, -inf  ;;  %v806_v7 = vshll.u32 %v805_v0, 16 }
 0x349   :  { %920 = vmax.xlane.f32.xlu2 %v919_v20  ;;  %v758_v14 = vpop.xlane.xlu1 %757  ;;  %v788_v5 = vpop.xlane.xlu0 %787  ;;  %v854_v0 = vcvt.s32.f32 %v2300_v11 }
 0x34a   :  { %v759_v3 = vcvt.f32.s32 %v758_v14  ;;  %v789_v12 = vcvt.f32.s32 %v788_v5  ;;  %vm882_vm3 = vcmp.eq.s32.totalorder %v2024_v59, %v2382_v26 }
 0x34b   :  { %v2407_v32 = vsel %vm882_vm3, -inf, %v2002_v41 }
 0x34c   :  { %917 = vmax.xlane.f32.xlu1 %v916_v54  ;;  %v2398_v1 = vadd.s32 %v761_v48, %v759_v3  ;;  %v2409_v13 = vadd.s32 %v791_v53, %v789_v12  ;;  %v940_v40 = vsel %vm146_vm1, %v2407_v32, -inf }
 0x34d   :  { %932 = vmax.xlane.f32.xlu0 %v931_v18 }
 0x34e   :  { %vm878_vm12 = vcmp.eq.s32.totalorder %v2024_v59, %v2398_v1  ;;  %vm880_vm4 = vcmp.eq.s32.totalorder %v2024_v59, %v2409_v13 }
 0x34f   :  { %v2418_v49 = vsel %vm878_vm12, -inf, %v1913_v24  ;;  %v2427_v58 = vsel %vm880_vm4, -inf, %v1892_v46 }
 0x350   :  { %v928_v42 = vsel %vm146_vm1, %v2418_v49, -inf  ;;  %v934_v28 = vsel %vm146_vm1, %v2427_v58, -inf }
 0x351   :  { %911 = vmax.xlane.f32.xlu2 %v910_v19  ;;  %v803_v22 = vpop.xlane.xlu1 %802 }
 0x352   :  { %v804_v34 = vcvt.f32.s32 %v803_v22 }
 0x354   :  { %926 = vmax.xlane.f32.xlu1 %v925_v50  ;;  %v2422_v41 = vadd.s32 %v806_v7, %v804_v34  ;;  %v857_v34 = vcvt.s32.f32 %v2312_v10  ;;  %v850_v10 = vcvt.f32.s32 %v2328_v45 }
 0x355   :  { %941 = vmax.xlane.f32.xlu0 %v940_v40 }
 0x356   :  { %vm881_vm6 = vcmp.eq.s32.totalorder %v2024_v59, %v2422_v41 }
 0x357   :  { %v2434_v24 = vsel %vm881_vm6, -inf, %v2014_v16  ;;  %v835_v16 = vcvt.f32.s32 %v2302_v37 }
 0x358   :  { %v937_v20 = vsel %vm146_vm1, %v2434_v24, -inf }
 0x359   :  { %929 = vmax.xlane.f32.xlu2 %v928_v42  ;;  %v836_v18 = vshll.u32 %v835_v16, 16 }
 0x35c   :  { %935 = vmax.xlane.f32.xlu1 %v934_v28 }
 0x361   :  { %938 = vmax.xlane.f32.xlu2 %v937_v20 }
 0x36f   :  { %v2438_v14 = vpop.xlane.xlu2 %902 }
 0x370   :  { %vm949_vm7 = vcmp.eq.f32.partialorder %v2294_v63, %v2438_v14 }
 0x371   :  { %v965_v46 = vsel %vm949_vm7, %v2024_v59, 16 }
 0x372   :  { %v2444_v5 = vsel %vm146_vm1, %v965_v46, 2147483647 }
 0x373   :  { %v983_v3 = vshra.s32 %v2444_v5, 16 }
 0x375   :  { %v2447_v2 = vcvt.s32.f32 %v983_v3 }
 0x377   :  { %986 = vmin.xlane.f32.xlu0 %v2447_v2 }
 0x38a   :  { %v833_v54 = vpop.xlane.xlu0 %832 }
 0x38b   :  { %v834_v48 = vcvt.f32.s32 %v833_v54  ;;  %v860_v54 = vcvt.s32.f32 %v2337_v21 }
 0x38d   :  { %v2451_v12 = vadd.s32 %v836_v18, %v834_v48 }
 0x38f   :  { %vm883_vm8 = vcmp.eq.s32.totalorder %v2024_v59, %v2451_v12 }
 0x390   :  { %v2456_v63 = vsel %vm883_vm8, -inf, %v1937_v39 }
 0x391   :  { %v943_v53 = vsel %vm146_vm1, %v2456_v63, -inf }
 0x392   :  { %v906_v19 = vpop.xlane.xlu0 %905  ;;  %944 = vmax.xlane.f32.xlu1 %v943_v53 }
 0x393   :  { %v1239_v37 = vsel %vm1237_vm9, %v2038_v17, %v906_v19  ;;  %vm950_vm14 = vcmp.eq.f32.partialorder %v2310_v57, %v906_v19  ;;  %v855_v57 = vcvt.s32.f32 %v2326_v60 }
 0x394   :  { %v2464_v22 = vsel %vm1254_vm10, %v1239_v37, %v854_v0  ;;  %v966_v20 = vsel %vm950_vm14, %v2024_v59, 16 }
 0x395   :  { %v2489_v3 = vsel %vm146_vm1, %v966_v20, 2147483647 }
 0x396   :  { %v998_v53 = vshra.s32 %v2489_v3, 16 }
 0x39a   :  { %v915_v50 = vpop.xlane.xlu0 %914 }
 0x39b   :  { %vm953_vm11 = vcmp.eq.f32.partialorder %v2319_v4, %v915_v50  ;;  %v1242_v39 = vsel %vm1237_vm9, %v2040_v9, %v915_v50  ;;  %v851_v9 = vshll.u32 %v850_v10, 16 }
 0x39c   :  { %v969_v11 = vsel %vm953_vm11, %v2024_v59, 16  ;;  %v2472_v40 = vsel %vm1254_vm10, %v1242_v39, %v857_v34  ;;  %v859_v34 = vcvt.s32.f32 %v2358_v30 }
 0x39d   :  { %v2475_v7 = vsel %vm146_vm1, %v969_v11, 2147483647  ;;  %v2527_v11 = vcvt.s32.f32 %v998_v53 }
 0x39e   :  { %v1043_v17 = vshra.s32 %v2475_v7, 16 }
 0x3a0   :  { %v2478_v42 = vcvt.s32.f32 %v1043_v17 }
 0x3a2   :  { %1046 = vmin.xlane.f32.xlu0 %v2478_v42 }
 0x3af   :  { %v848_v4 = vpop.xlane.xlu1 %847 }
 0x3b0   :  { %v849_v28 = vcvt.f32.s32 %v848_v4 }
 0x3b2   :  { %v2484_v46 = vadd.s32 %v851_v9, %v849_v28  ;;  %v863_v9 = vcvt.s32.f32 %v2343_v56  ;;  %v858_v28 = vcvt.s32.f32 %v2345_v52 }
 0x3b4   :  { %vm884_vm13 = vcmp.eq.s32.totalorder %v2024_v59, %v2484_v46 }
 0x3b5   :  { %v2492_v16 = vsel %vm884_vm13, -inf, %v2020_v33 }
 0x3b6   :  { %v946_v45 = vsel %vm146_vm1, %v2492_v16, -inf }
 0x3b7   :  { %947 = vmax.xlane.f32.xlu2 %v946_v45  ;;  %v909_v18 = vpop.xlane.xlu1 %908 }
 0x3b8   :  { %v924_v48 = vpop.xlane.xlu0 %923  ;;  %vm951_vm15 = vcmp.eq.f32.partialorder %v2341_v8, %v909_v18  ;;  %v1240_v0 = vsel %vm1237_vm9, %v2047_v36, %v909_v18  ;;  %v856_v18 = vcvt.s32.f32 %v2364_v6  ;;  %v2872_v6 = vld [vmem:[#allocation7_spill] sm:$0xff] }
 0x3b9   :  { %vm956_vm0 = vcmp.eq.f32.partialorder %v2350_v27, %v924_v48  ;;  %v1245_v33 = vsel %vm1237_vm9, %v2076_v23, %v924_v48  ;;  %v967_v19 = vsel %vm951_vm15, %v2024_v59, 16  ;;  %v2508_v21 = vsel %vm1254_vm10, %v1240_v0, %v855_v57 }
 0x3ba   :  { %v972_v60 = vsel %vm956_vm0, %v2024_v59, 16  ;;  %v2511_v37 = vsel %vm1254_vm10, %v1245_v33, %v860_v54  ;;  %v2514_v8 = vsel %vm146_vm1, %v967_v19, 2147483647 }
 0x3bb   :  { %v2517_v36 = vsel %vm146_vm1, %v972_v60, 2147483647  ;;  %v1013_v27 = vshra.s32 %v2514_v8, 16  ;;  %v861_v60 = vcvt.s32.f32 %v2380_v51 }
 0x3bc   :  { %v1088_v23 = vshra.s32 %v2517_v36, 16  ;;  %v2522_v50 = vpop.xlane.xlu2 %920 }
 0x3bd   :  { %v1244_v39 = vsel %vm1237_vm9, %v2078_v15, %v2522_v50  ;;  %v2529_v17 = vcvt.s32.f32 %v1013_v27  ;;  %v866_v27 = vcvt.s32.f32 %v2382_v26  ;;  %vm955_vm4 = vcmp.eq.f32.partialorder %v2369_v55, %v2522_v50 }
 0x3be   :  { %v2531_v10 = vcvt.s32.f32 %v1088_v23  ;;  %v2534_v4 = vsel %vm1254_vm10, %v1244_v39, %v859_v34 }
 0x3bf   :  { %1001 = vmin.xlane.f32.xlu2 %v2527_v11  ;;  %1016 = vmin.xlane.f32.xlu1 %v2529_v17  ;;  %v918_v30 = vpop.xlane.xlu1 %917 }
 0x3c0   :  { %v933_v20 = vpop.xlane.xlu0 %932  ;;  %vm954_vm2 = vcmp.eq.f32.partialorder %v2375_v31, %v918_v30  ;;  %v1243_v15 = vsel %vm1237_vm9, %v2084_v38, %v918_v30  ;;  %1091 = vmin.xlane.f32.xlu0 %v2531_v10 }
 0x3c1   :  { %vm959_vm5 = vcmp.eq.f32.partialorder %v2378_v25, %v933_v20  ;;  %v1248_v45 = vsel %vm1237_vm9, %v2087_v47, %v933_v20  ;;  %v970_v56 = vsel %vm954_vm2, %v2024_v59, 16  ;;  %v2556_v31 = vsel %vm1254_vm10, %v1243_v15, %v858_v28 }
 0x3c2   :  { %v975_v52 = vsel %vm959_vm5, %v2024_v59, 16  ;;  %v2550_v57 = vsel %vm146_vm1, %v970_v56, 2147483647  ;;  %v2559_v38 = vsel %vm1254_vm10, %v1248_v45, %v863_v9  ;;  %v862_v20 = vcvt.s32.f32 %v2398_v1  ;;  %v2873_v45 = vld [vmem:[#allocation6_spill] sm:$0xff] }
 0x3c3   :  { %v2553_v54 = vsel %vm146_vm1, %v975_v52, 2147483647  ;;  %v1058_v47 = vshra.s32 %v2550_v57, 16  ;;  %v864_v1 = vcvt.s32.f32 %v2409_v13 }
 0x3c4   :  { %v1133_v25 = vshra.s32 %v2553_v54, 16  ;;  %v912_v48 = vpop.xlane.xlu2 %911 }
 0x3c5   :  { %v1241_v53 = vsel %vm1237_vm9, %v2106_v29, %v912_v48  ;;  %v2566_v0 = vcvt.s32.f32 %v1058_v47  ;;  %vm952_vm8 = vcmp.eq.f32.partialorder %v2392_v61, %v912_v48 }
 0x3c6   :  { %v2568_v33 = vcvt.s32.f32 %v1133_v25  ;;  %v2571_v19 = vsel %vm1254_vm10, %v1241_v53, %v856_v18  ;;  %v2874_v53 = vld [vmem:[#allocation9_spill] sm:$0xff] }
 0x3c7   :  { %1061 = vmin.xlane.f32.xlu1 %v2566_v0  ;;  %v927_v23 = vpop.xlane.xlu1 %926 }
 0x3c8   :  { %v942_v34 = vpop.xlane.xlu0 %941  ;;  %vm957_vm3 = vcmp.eq.f32.partialorder %v2404_v43, %v927_v23  ;;  %v1246_v29 = vsel %vm1237_vm9, %v2124_v62, %v927_v23  ;;  %1136 = vmin.xlane.f32.xlu0 %v2568_v33 }
 0x3c9   :  { %vm962_vm12 = vcmp.eq.f32.partialorder %v2407_v32, %v942_v34  ;;  %v1251_v39 = vsel %vm1237_vm9, %v2872_v6, %v942_v34  ;;  %v973_v51 = vsel %vm957_vm3, %v2024_v59, 16  ;;  %v2592_v43 = vsel %vm1254_vm10, %v1246_v29, %v861_v60 }
 0x3ca   :  { %v978_v26 = vsel %vm962_vm12, %v2024_v59, 16  ;;  %v2586_v9 = vsel %vm146_vm1, %v973_v51, 2147483647  ;;  %v2595_v62 = vsel %vm1254_vm10, %v1251_v39, %v866_v27 }
 0x3cb   :  { %v2589_v28 = vsel %vm146_vm1, %v978_v26, 2147483647  ;;  %v1103_v32 = vshra.s32 %v2586_v9, 16  ;;  %v968_v26 = vsel %vm952_vm8, %v2024_v59, 16 }
 0x3cc   :  { %v1178_v30 = vshra.s32 %v2589_v28, 16  ;;  %v930_v15 = vpop.xlane.xlu2 %929 }
 0x3cd   :  { %vm958_vm6 = vcmp.eq.f32.partialorder %v2418_v49, %v930_v15  ;;  %v1247_v56 = vsel %vm1237_vm9, %v2873_v45, %v930_v15  ;;  %v2605_v52 = vcvt.s32.f32 %v1103_v32  ;;  %v971_v49 = vsel %vm955_vm4, %v2024_v59, 16 }
 0x3ce   :  { %v2607_v47 = vcvt.s32.f32 %v1178_v30  ;;  %v974_v25 = vsel %vm958_vm6, %v2024_v59, 16  ;;  %v2611_v18 = vsel %vm1254_vm10, %v1247_v56, %v862_v20  ;;  %v2649_v20 = vsel %vm146_vm1, %v968_v26, 2147483647 }
 0x3cf   :  { %1106 = vmin.xlane.f32.xlu1 %v2605_v52  ;;  %v936_v55 = vpop.xlane.xlu1 %935  ;;  %v2616_v50 = vsel %vm146_vm1, %v974_v25, 2147483647  ;;  %v1028_v61 = vshra.s32 %v2649_v20, 16  ;;  %v982_v56 = vand.u32 65535, %v2444_v5  ;;  %v2875_v5 = vld [vmem:[#allocation10_spill] sm:$0xff] }
 0x3d0   :  { %vm960_vm7 = vcmp.eq.f32.partialorder %v2427_v58, %v936_v55  ;;  %v1249_v60 = vsel %vm1237_vm9, %v2874_v53, %v936_v55  ;;  %1181 = vmin.xlane.f32.xlu0 %v2607_v47  ;;  %v1118_v27 = vshra.s32 %v2616_v50, 16  ;;  %v2635_v58 = vsel %vm146_vm1, %v971_v49, 2147483647 }
 0x3d1   :  { %v976_v23 = vsel %vm960_vm7, %v2024_v59, 16  ;;  %v2626_v13 = vsel %vm1254_vm10, %v1249_v60, %v864_v1  ;;  %v1073_v51 = vshra.s32 %v2635_v58, 16  ;;  %v2656_v15 = vcvt.s32.f32 %v1028_v61 }
 0x3d2   :  { %v2628_v34 = vcvt.s32.f32 %v1118_v27  ;;  %v2631_v29 = vsel %vm146_vm1, %v976_v23, 2147483647  ;;  %v984_v55 = vcvt.s32.f32 %v982_v56  ;;  %v867_v53 = vcvt.s32.f32 %v2451_v12 }
 0x3d3   :  { %v1148_v6 = vshra.s32 %v2631_v29, 16  ;;  %v2646_v30 = vcvt.s32.f32 %v1073_v51  ;;  %v868_v12 = vcvt.s32.f32 %v2484_v46  ;;  %v997_v46 = vand.u32 65535, %v2489_v3 }
 0x3d4   :  { %1121 = vmin.xlane.f32.xlu2 %v2628_v34  ;;  %v2644_v32 = vpop.xlane.xlu2 %938  ;;  %v1012_v3 = vand.u32 65535, %v2514_v8  ;;  %v1057_v8 = vand.u32 65535, %v2550_v57 }
 0x3d5   :  { %v2639_v39 = vcvt.s32.f32 %v1148_v6  ;;  %vm961_vm11 = vcmp.eq.f32.partialorder %v2434_v24, %v2644_v32 }
 0x3d6   :  { %v977_v48 = vsel %vm961_vm11, %v2024_v59, 16 }
 0x3d7   :  { %1151 = vmin.xlane.f32.xlu1 %v2639_v39  ;;  %v2659_v45 = vsel %vm146_vm1, %v977_v48, 2147483647 }
 0x3d8   :  { %v1163_v25 = vshra.s32 %v2659_v45, 16 }
 0x3da   :  { %v2666_v49 = vcvt.s32.f32 %v1163_v25 }
 0x3dc   :  { %1076 = vmin.xlane.f32.xlu2 %v2646_v30 }
 0x3e4   :  { %1031 = vmin.xlane.f32.xlu2 %v2656_v15 }
 0x3ea   :  { %v2664_v1 = vpop.xlane.xlu0 %986 }
 0x3eb   :  { %vm988_vm14 = vcmp.eq.f32.partialorder %v2447_v2, %v2664_v1 }
 0x3ec   :  { %v989_v24 = vsel %vm988_vm14, %v984_v55, inf  ;;  %1166 = vmin.xlane.f32.xlu2 %v2666_v49  ;;  %vm1271_vm14 = vcmask 23552  }
 0x3ed   :  { %990 = vmin.xlane.f32.xlu1 %v989_v24 }
 0x405   :  { %v945_v60 = vpop.xlane.xlu1 %944 }
 0x406   :  { %vm963_vm13 = vcmp.eq.f32.partialorder %v2456_v63, %v945_v60  ;;  %v1252_v27 = vsel %vm1237_vm9, %v2875_v5, %v945_v60  ;;  %v1042_v5 = vand.u32 65535, %v2475_v7 }
 0x407   :  { %v979_v23 = vsel %vm963_vm13, %v2024_v59, 16  ;;  %v2677_v6 = vsel %vm1254_vm10, %v1252_v27, %v867_v53 }
 0x408   :  { %v2680_v51 = vsel %vm146_vm1, %v979_v23, 2147483647  ;;  %v1044_v23 = vcvt.s32.f32 %v1042_v5 }
 0x409   :  { %v1193_v2 = vshra.s32 %v2680_v51, 16 }
 0x40b   :  { %v2683_v26 = vcvt.s32.f32 %v1193_v2 }
 0x40d   :  { %1196 = vmin.xlane.f32.xlu1 %v2683_v26 }
 0x415   :  { %v2687_v61 = vpop.xlane.xlu0 %1046 }
 0x42a   :  { %v948_v63 = vpop.xlane.xlu2 %947 }
 0x42b   :  { %vm964_vm15 = vcmp.eq.f32.partialorder %v2492_v16, %v948_v63  ;;  %v1253_v48 = vsel %vm1237_vm9, %v2199_v35, %v948_v63  ;;  %v999_v35 = vcvt.s32.f32 %v997_v46  ;;  %v1014_v63 = vcvt.s32.f32 %v1012_v3 }
 0x42c   :  { %v980_v56 = vsel %vm964_vm15, %v2024_v59, 16  ;;  %v2694_v25 = vsel %vm1254_vm10, %v1253_v48, %v868_v12  ;;  %v1132_v12 = vand.u32 65535, %v2553_v54  ;;  %v1087_v54 = vand.u32 65535, %v2517_v36 }
 0x42d   :  { %v2697_v55 = vsel %vm146_vm1, %v980_v56, 2147483647  ;;  %vm1048_vm1 = vcmp.eq.f32.partialorder %v2478_v42, %v2687_v61  ;;  %v1177_v36 = vand.u32 65535, %v2589_v28  ;;  %v1027_v28 = vand.u32 65535, %v2649_v20 }
 0x42e   :  { %v1208_v24 = vshra.s32 %v2697_v55, 16  ;;  %v1049_v2 = vsel %vm1048_vm1, %v1044_v23, inf  ;;  %v1134_v42 = vcvt.s32.f32 %v1132_v12  ;;  %v1089_v57 = vcvt.s32.f32 %v1087_v54 }
 0x430   :  { %v2701_v53 = vcvt.s32.f32 %v1208_v24 }
 0x432   :  { %1211 = vmin.xlane.f32.xlu2 %v2701_v53  ;;  %v2704_v16 = vpop.xlane.xlu2 %1001  ;;  %v2706_v60 = vpop.xlane.xlu1 %1016 }
 0x433   :  { %vm1003_vm0 = vcmp.eq.f32.partialorder %v2527_v11, %v2704_v16  ;;  %v2710_v59 = vpop.xlane.xlu0 %1091  ;;  %vm1018_vm2 = vcmp.eq.f32.partialorder %v2529_v17, %v2706_v60  ;;  %v1059_v17 = vcvt.s32.f32 %v1057_v8  ;;  %v993_v8 = vcvt.f32.s32 %v2664_v1 }
 0x434   :  { %v1004_v27 = vsel %vm1003_vm0, %v999_v35, inf  ;;  %v1019_v7 = vsel %vm1018_vm2, %v1014_v63, inf  ;;  %vm1093_vm12 = vcmp.eq.f32.partialorder %v2531_v10, %v2710_v59  ;;  %v1147_v10 = vand.u32 65535, %v2631_v29 }
 0x435   :  { %1005 = vmin.xlane.f32.xlu0 %v1004_v27  ;;  %v1094_v5 = vsel %vm1093_vm12, %v1089_v57, inf  ;;  %v1072_v29 = vand.u32 65535, %v2635_v58  ;;  %v994_v20 = vshll.u32 %v993_v8, 16  ;;  %v853_v57 = vcvt.s32.f32 %v2289_v44 }
 0x436   :  { %v1117_v58 = vand.u32 65535, %v2616_v50  ;;  %v1023_v8 = vcvt.f32.s32 %v2706_v60 }
 0x43a   :  { %1050 = vmin.xlane.f32.xlu2 %v1049_v2  ;;  %v2719_v11 = vpop.xlane.xlu1 %1061  ;;  %v1179_v2 = vcvt.s32.f32 %v1177_v36 }
 0x43b   :  { %v2721_v48 = vpop.xlane.xlu0 %1136  ;;  %vm1063_vm3 = vcmp.eq.f32.partialorder %v2566_v0, %v2719_v11  ;;  %v1068_v60 = vcvt.f32.s32 %v2719_v11 }
 0x43c   :  { %vm1138_vm5 = vcmp.eq.f32.partialorder %v2568_v33, %v2721_v48  ;;  %v1064_v46 = vsel %vm1063_vm3, %v1059_v17, inf  ;;  %v1102_v33 = vand.u32 65535, %v2586_v9 }
 0x43d   :  { %1020 = vmin.xlane.f32.xlu0 %v1019_v7  ;;  %v1139_v56 = vsel %vm1138_vm5, %v1134_v42, inf  ;;  %v1029_v42 = vcvt.s32.f32 %v1027_v28 }
 0x43e   :  { %v1104_v0 = vcvt.s32.f32 %v1102_v33 }
 0x442   :  { %1140 = vmin.xlane.f32.xlu2 %v1139_v56  ;;  %v2729_v24 = vpop.xlane.xlu1 %1106 }
 0x443   :  { %vm1108_vm4 = vcmp.eq.f32.partialorder %v2605_v52, %v2729_v24  ;;  %v2738_v27 = vpop.xlane.xlu0 %1181  ;;  %v1149_v52 = vcvt.s32.f32 %v1147_v10  ;;  %v1192_v10 = vand.u32 65535, %v2680_v51  ;;  %v1113_v11 = vcvt.f32.s32 %v2729_v24 }
 0x444   :  { %v1109_v3 = vsel %vm1108_vm4, %v1104_v0, inf  ;;  %vm1183_vm6 = vcmp.eq.f32.partialorder %v2607_v47, %v2738_v27  ;;  %v1119_v0 = vcvt.s32.f32 %v1117_v58 }
 0x445   :  { %1065 = vmin.xlane.f32.xlu0 %v1064_v46  ;;  %v1184_v12 = vsel %vm1183_vm6, %v1179_v2, inf  ;;  %v2876_v46 = vld [vmem:[#allocation5_spill] sm:$0xff] }
 0x446   :  { %v1238_v33 = vsel %vm1237_vm9, %v2876_v46, %v2438_v14  ;;  %v1162_v14 = vand.u32 65535, %v2659_v45  ;;  %v1008_v45 = vcvt.f32.s32 %v2704_v16 }
 0x447   :  { %v2734_v35 = vpop.xlane.xlu2 %1121 }
 0x448   :  { %vm1123_vm13 = vcmp.eq.f32.partialorder %v2628_v34, %v2734_v35  ;;  %v1164_v44 = vcvt.s32.f32 %v1162_v14  ;;  %v1194_v34 = vcvt.s32.f32 %v1192_v10  ;;  %v1069_v14 = vshll.u32 %v1068_v60, 16 }
 0x449   :  { %v1124_v36 = vsel %vm1123_vm13, %v1119_v0, inf  ;;  %v1128_v60 = vcvt.f32.s32 %v2734_v35 }
 0x44a   :  { %1095 = vmin.xlane.f32.xlu2 %v1094_v5  ;;  %v2741_v23 = vpop.xlane.xlu1 %1151  ;;  %v1255_v5 = vsel %vm1254_vm10, %v1238_v33, %v853_v57  ;;  %v1143_v33 = vcvt.f32.s32 %v2721_v48  ;;  %v1098_v48 = vcvt.f32.s32 %v2710_v59 }
 0x44b   :  { %vm1153_vm7 = vcmp.eq.f32.partialorder %v2639_v39, %v2741_v23  ;;  %v1074_v39 = vcvt.s32.f32 %v1072_v29  ;;  %v1053_v29 = vcvt.f32.s32 %v2687_v61 }
 0x44c   :  { %v1154_v63 = vsel %vm1153_vm7, %v1149_v52, inf  ;;  %v1207_v52 = vand.u32 65535, %v2697_v55 }
 0x44d   :  { %1110 = vmin.xlane.f32.xlu0 %v1109_v3 }
 0x44f   :  { %v2746_v9 = vpop.xlane.xlu2 %1076 }
 0x450   :  { %vm1078_vm11 = vcmp.eq.f32.partialorder %v2646_v30, %v2746_v9 }
 0x451   :  { %v1079_v54 = vsel %vm1078_vm11, %v1074_v39, inf }
 0x452   :  { %1185 = vmin.xlane.f32.xlu2 %v1184_v12 }
 0x455   :  { %1155 = vmin.xlane.f32.xlu0 %v1154_v63 }
 0x457   :  { %v2751_v7 = vpop.xlane.xlu2 %1031 }
 0x458   :  { %vm1033_vm8 = vcmp.eq.f32.partialorder %v2656_v15, %v2751_v7 }
 0x459   :  { %v1034_v47 = vsel %vm1033_vm8, %v1029_v42, inf  ;;  %v1009_v42 = vshll.u32 %v1008_v45, 16 }
 0x45a   :  { %1035 = vmin.xlane.f32.xlu1 %v1034_v47 }
 0x45f   :  { %v2768_v3 = vpop.xlane.xlu2 %1166 }
 0x460   :  { %v991_v56 = vpop.xlane.xlu1 %990  ;;  %vm1168_vm15 = vcmp.eq.f32.partialorder %v2666_v49, %v2768_v3  ;;  %v1209_v49 = vcvt.s32.f32 %v1207_v52  ;;  %v1099_v52 = vshll.u32 %v1098_v48, 16  ;;  %v1173_v35 = vcvt.f32.s32 %v2768_v3  ;;  %v2877_v48 = vld [vmem:[#allocation8_spill] sm:$0xff] }
 0x461   :  { %v992_v17 = vcvt.f32.s32 %v991_v56  ;;  %v1169_v50 = vsel %vm1168_vm15, %v1164_v44, inf  ;;  %v1054_v56 = vshll.u32 %v1053_v29, 16 }
 0x462   :  { %1080 = vmin.xlane.f32.xlu1 %v1079_v54 }
 0x463   :  { %v995_v15 = vadd.s32 %v994_v20, %v992_v17 }
 0x465   :  { %v1221_v1 = vcvt.s32.f32 %v995_v15 }
 0x467   :  { %v1272_v30 = vsel %vm1271_vm14, %v1255_v5, %v1221_v1  ;;  %v1144_v5 = vshll.u32 %v1143_v33, 16 }
 0x46a   :  { %1125 = vmin.xlane.f32.xlu1 %v1124_v36 }
 0x472   :  { %1170 = vmin.xlane.f32.xlu1 %v1169_v50 }
 0x47b   :  { %1288 = vxpose.xlu2.b32.start [1/16] (narrow) %v1272_v30, 8 }
 0x480   :  { %v2774_v2 = vpop.xlane.xlu1 %1196 }
 0x481   :  { %vm1198_vm0 = vcmp.eq.f32.partialorder %v2683_v26, %v2774_v2 }
 0x482   :  { %v1199_v12 = vsel %vm1198_vm0, %v1194_v34, inf }
 0x483   :  { %1200 = vmin.xlane.f32.xlu0 %v1199_v12 }
 0x4a5   :  { %v2780_v28 = vpop.xlane.xlu2 %1211 }
 0x4a6   :  { %vm1213_vm1 = vcmp.eq.f32.partialorder %v2701_v53, %v2780_v28  ;;  %v1024_v53 = vshll.u32 %v1023_v8, 16 }
 0x4a7   :  { %v1214_v63 = vsel %vm1213_vm1, %v1209_v49, inf }
 0x4a8   :  { %v1006_v51 = vpop.xlane.xlu0 %1005  ;;  %1215 = vmin.xlane.f32.xlu1 %v1214_v63 }
 0x4a9   :  { %v1007_v47 = vcvt.f32.s32 %v1006_v51  ;;  %v1114_v51 = vshll.u32 %v1113_v11, 16 }
 0x4ab   :  { %v1010_v26 = vadd.s32 %v1009_v42, %v1007_v47 }
 0x4ad   :  { %v1222_v39 = vcvt.s32.f32 %v1010_v26  ;;  %v1051_v55 = vpop.xlane.xlu2 %1050 }
 0x4ae   :  { %v1052_v16 = vcvt.f32.s32 %v1051_v55 }
 0x4af   :  { %v1273_v20 = vsel %vm1271_vm14, %v2464_v22, %v1222_v39 }
 0x4b0   :  { %v1055_v17 = vadd.s32 %v1054_v56, %v1052_v16  ;;  %v1021_v54 = vpop.xlane.xlu0 %1020  ;;  %1289 = vxpose.xlu2.b32.cont [2/16] (narrow) %v1273_v20, 8 }
 0x4b1   :  { %v1022_v46 = vcvt.f32.s32 %v1021_v54 }
 0x4b2   :  { %v1225_v15 = vcvt.s32.f32 %v1055_v17 }
 0x4b3   :  { %v1025_v57 = vadd.s32 %v1024_v53, %v1022_v46 }
 0x4b4   :  { %v1276_v61 = vsel %vm1271_vm14, %v2472_v40, %v1225_v15 }
 0x4b5   :  { %v1223_v58 = vcvt.s32.f32 %v1025_v57  ;;  %v1141_v1 = vpop.xlane.xlu2 %1140 }
 0x4b6   :  { %v1142_v30 = vcvt.f32.s32 %v1141_v1 }
 0x4b7   :  { %v1274_v22 = vsel %vm1271_vm14, %v2508_v21, %v1223_v58 }
 0x4b8   :  { %v1145_v0 = vadd.s32 %v1144_v5, %v1142_v30  ;;  %v1066_v36 = vpop.xlane.xlu0 %1065  ;;  %1290 = vxpose.xlu2.b32.cont [3/16] (narrow) %v1274_v22, 8  ;;  %v1129_v5 = vshll.u32 %v1128_v60, 16 }
 0x4b9   :  { %v1067_v44 = vcvt.f32.s32 %v1066_v36 }
 0x4ba   :  { %v1231_v50 = vcvt.s32.f32 %v1145_v0 }
 0x4bb   :  { %v1070_v10 = vadd.s32 %v1069_v14, %v1067_v44  ;;  %v1188_v44 = vcvt.f32.s32 %v2738_v27 }
 0x4bc   :  { %v1282_v40 = vsel %vm1271_vm14, %v2559_v38, %v1231_v50  ;;  %v1158_v38 = vcvt.f32.s32 %v2741_v23  ;;  %v1083_v23 = vcvt.f32.s32 %v2746_v9  ;;  %v1218_v50 = vcvt.f32.s32 %v2780_v28 }
 0x4bd   :  { %v1226_v34 = vcvt.s32.f32 %v1070_v10  ;;  %v1096_v12 = vpop.xlane.xlu2 %1095 }
 0x4be   :  { %v1097_v45 = vcvt.f32.s32 %v1096_v12  ;;  %v1159_v39 = vshll.u32 %v1158_v38, 16  ;;  %v1084_v15 = vshll.u32 %v1083_v23, 16 }
 0x4bf   :  { %v1277_v21 = vsel %vm1271_vm14, %v2556_v31, %v1226_v34  ;;  %v1038_v31 = vcvt.f32.s32 %v2751_v7  ;;  %v865_v34 = vcvt.s32.f32 %v2422_v41 }
 0x4c0   :  { %v1100_v49 = vadd.s32 %v1099_v52, %v1097_v45  ;;  %v1111_v63 = vpop.xlane.xlu0 %1110  ;;  %v1219_v52 = vshll.u32 %v1218_v50, 16 }
 0x4c1   :  { %v1112_v42 = vcvt.f32.s32 %v1111_v63  ;;  %v1039_v17 = vshll.u32 %v1038_v31, 16  ;;  %v1203_v63 = vcvt.f32.s32 %v2774_v2 }
 0x4c2   :  { %v1228_v47 = vcvt.s32.f32 %v1100_v49 }
 0x4c3   :  { %v1115_v59 = vadd.s32 %v1114_v51, %v1112_v42 }
 0x4c4   :  { %v1279_v29 = vsel %vm1271_vm14, %v2511_v37, %v1228_v47  ;;  %v1204_v47 = vshll.u32 %v1203_v63, 16 }
 0x4c5   :  { %v1229_v26 = vcvt.s32.f32 %v1115_v59  ;;  %v1186_v14 = vpop.xlane.xlu2 %1185 }
 0x4c6   :  { %v1187_v10 = vcvt.f32.s32 %v1186_v14 }
 0x4c7   :  { %v1280_v24 = vsel %vm1271_vm14, %v2592_v43, %v1229_v26 }
 0x4c8   :  { %v1156_v8 = vpop.xlane.xlu0 %1155 }
 0x4c9   :  { %v1157_v55 = vcvt.f32.s32 %v1156_v8 }
 0x4cb   :  { %v1160_v56 = vadd.s32 %v1159_v39, %v1157_v55 }
 0x4cd   :  { %v1232_v16 = vcvt.s32.f32 %v1160_v56  ;;  %v1036_v20 = vpop.xlane.xlu1 %1035 }
 0x4ce   :  { %v1037_v54 = vcvt.f32.s32 %v1036_v20 }
 0x4cf   :  { %v1283_v53 = vsel %vm1271_vm14, %v2626_v13, %v1232_v16 }
 0x4d0   :  { %v1040_v37 = vadd.s32 %v1039_v17, %v1037_v54 }
 0x4d2   :  { %v1224_v46 = vcvt.s32.f32 %v1040_v37 }
 0x4d4   :  { %v1275_v43 = vsel %vm1271_vm14, %v2571_v19, %v1224_v46 }
 0x4d5   :  { %1291 = vxpose.xlu2.b32.cont [4/16] (narrow) %v1275_v43, 8  ;;  %v1081_v33 = vpop.xlane.xlu1 %1080 }
 0x4d6   :  { %v1082_v57 = vcvt.f32.s32 %v1081_v33 }
 0x4d8   :  { %v1085_v7 = vadd.s32 %v1084_v15, %v1082_v57 }
 0x4da   :  { %v1227_v58 = vcvt.s32.f32 %v1085_v7 }
 0x4dc   :  { %v1278_v1 = vsel %vm1271_vm14, %v2534_v4, %v1227_v58  ;;  %v1174_v4 = vshll.u32 %v1173_v35, 16 }
 0x4dd   :  { %1292 = vxpose.xlu2.b32.cont [5/16] (narrow) %v1276_v61, 8  ;;  %v1126_v13 = vpop.xlane.xlu1 %1125 }
 0x4de   :  { %v1127_v30 = vcvt.f32.s32 %v1126_v13 }
 0x4e0   :  { %v1130_v9 = vadd.s32 %v1129_v5, %v1127_v30 }
 0x4e2   :  { %v1230_v22 = vcvt.s32.f32 %v1130_v9 }
 0x4e4   :  { %v1281_v19 = vsel %vm1271_vm14, %v2611_v18, %v1230_v22  ;;  %v1250_v18 = vsel %vm1237_vm9, %v2877_v48, %v2644_v32 }
 0x4e5   :  { %1293 = vxpose.xlu2.b32.cont [6/16] (narrow) %v1277_v21, 8  ;;  %v1171_v0 = vpop.xlane.xlu1 %1170  ;;  %v1267_v3 = vsel %vm1254_vm10, %v1250_v18, %v865_v34 }
 0x4e6   :  { %v1172_v36 = vcvt.f32.s32 %v1171_v0 }
 0x4e8   :  { %v1175_v61 = vadd.s32 %v1174_v4, %v1172_v36 }
 0x4ea   :  { %v1233_v11 = vcvt.s32.f32 %v1175_v61 }
 0x4ec   :  { %v1284_v49 = vsel %vm1271_vm14, %v1267_v3, %v1233_v11 }
 0x4ed   :  { %1294 = vxpose.xlu2.b32.cont [7/16] (narrow) %v1278_v1, 8 }
 0x4f5   :  { %1295 = vxpose.xlu2.b32.cont [8/16] (narrow) %v1279_v29, 8 }
 0x4f6   :  { %v1201_v27 = vpop.xlane.xlu0 %1200 }
 0x4f7   :  { %v1202_v28 = vcvt.f32.s32 %v1201_v27 }
 0x4f9   :  { %v1205_v59 = vadd.s32 %v1204_v47, %v1202_v28 }
 0x4fb   :  { %v1235_v38 = vcvt.s32.f32 %v1205_v59 }
 0x4fd   :  { %1296 = vxpose.xlu2.b32.cont [9/16] (narrow) %v1280_v24, 8  ;;  %v1286_v26 = vsel %vm1271_vm14, %v2677_v6, %v1235_v38 }
 0x505   :  { %1297 = vxpose.xlu2.b32.cont [10/16] (narrow) %v1281_v19, 8 }
 0x50d   :  { %1298 = vxpose.xlu2.b32.cont [11/16] (narrow) %v1282_v40, 8  ;;  %v1189_v40 = vshll.u32 %v1188_v44, 16 }
 0x50f   :  { %v1190_v45 = vadd.s32 %v1189_v40, %v1187_v10 }
 0x511   :  { %v1234_v51 = vcvt.s32.f32 %v1190_v45 }
 0x513   :  { %v1285_v29 = vsel %vm1271_vm14, %v2595_v62, %v1234_v51 }
 0x515   :  { %1299 = vxpose.xlu2.b32.cont [12/16] (narrow) %v1283_v53, 8 }
 0x51b   :  { %v1216_v12 = vpop.xlane.xlu1 %1215 }
 0x51c   :  { %v1217_v21 = vcvt.f32.s32 %v1216_v12 }
 0x51d   :  { %1300 = vxpose.xlu2.b32.cont [13/16] (narrow) %v1284_v49, 8 }
 0x51e   :  { %v1220_v32 = vadd.s32 %v1219_v52, %v1217_v21 }
 0x520   :  { %v1236_v42 = vcvt.s32.f32 %v1220_v32 }
 0x522   :  { %v1287_v41 = vsel %vm1271_vm14, %v2694_v25, %v1236_v42 }
 0x525   :  { %1301 = vxpose.xlu2.b32.cont [14/16] (narrow) %v1285_v29, 8 }
 0x52d   :  { %1302 = vxpose.xlu2.b32.cont [15/16] (narrow) %v1286_v26, 8 }
 0x535   :  { %1303 = vxpose.xlu2.b32.end [16/16] (narrow) %v1287_v41, 8 }
 0x556   :  { %v1304_v25 = vpop.trf.xlu2 }
 0x557   :  { %1320 = vst [vmem:[#allocation2] sm:$0xf] %v1304_v25 }
 0x558   :  { %1331 = dma.vmem_to_hbm [thread:$0]  %s1327_s20, 64, %s1329_s22, [#allocation3]  }
 0x559   :  { %1454 = dma.done.wait [#allocation3], 64  }
 0x55a   :  { %1455 = vsyncadd [#allocation3], 4294967232 }
 0x55b   :  { %1336 = vsyncpa [#allocation3], 1 }

</bundles_post_ra>
